<compile_context>
chip_gen: v5e
topology: v5e:2x2
jax: 0.10.0
libtpu: 0.0.40
codegen_flags: <defaults>
</compile_context>

<pallas_src>
import functools

import jax
import jax.numpy as jnp
from jax.experimental import pallas as pl
from jax.experimental.pallas import tpu as pltpu

EPS = 1e-5
LANE = 128
TM_TARGET = 1024  # target lane tile (review: 1024-2048), rounded to row width


def _round_up(x, m):
    return (x + m - 1) // m * m


# ----------------------------- Pallas kernels ------------------------------


def _conv_grid_kernel(w_ref, b_ref, xa_ref, xb_ref, m_ref, o_ref, st_ref, *,
                      kh, kw, wl):
    """Fused conv matmul + bias + masked BN partial statistics for one tile.

    xa_ref: this tile of the flat input grid; xb_ref: the next tile (halo).
    Tap (di, dj) of the conv is the static lane slice starting at di*wl + dj.
    """
    t = o_ref.shape[1]
    band = jnp.concatenate([xa_ref[...], xb_ref[...]], axis=1)      # (Ci, 2T)
    slabs = []
    for di in range(kh):
        for dj in range(kw):
            off = di * wl + dj
            slabs.append(band[:, off:off + t])
    patches = jnp.concatenate(slabs, axis=0)                        # (K, T)
    acc = (jnp.dot(w_ref[...], patches, preferred_element_type=jnp.float32)
           + b_ref[...])                                            # (Co, T) f32
    o_ref[...] = acc.astype(o_ref.dtype)

    # BatchNorm batch statistics (f32) over valid output positions only.
    # Every tile contains some invalid lanes (row-width padding + conv
    # margin), so the cheap mask multiply runs on all tiles.
    am = acc * m_ref[...].astype(jnp.float32)
    ps = jnp.sum(am, axis=1, keepdims=True)                         # (Co, 1)
    pq = jnp.sum(am * am, axis=1, keepdims=True)                    # (Co, 1)
    zpad = jnp.zeros((ps.shape[0], LANE - 2), jnp.float32)
    st_ref[...] = jnp.concatenate([ps, pq, zpad], axis=1)           # (Co, 128)


def _mm_bias_kernel(w_ref, x_ref, b_ref, o_ref):
    # (R, K)bf16 @ (K, T) -> f32 accumulate, + per-row bias, bf16 store.
    xv = x_ref[...].astype(jnp.bfloat16)
    acc = jnp.dot(w_ref[...], xv, preferred_element_type=jnp.float32) + b_ref[...]
    o_ref[...] = acc.astype(o_ref.dtype)


def _scale_shift_kernel(x_ref, a_ref, b_ref, o_ref, *, relu):
    # Per-channel affine (== BatchNorm apply), optional ReLU; f32 math.
    y = x_ref[...].astype(jnp.float32) * a_ref[...] + b_ref[...]
    if relu:
        y = jnp.maximum(y, 0.0)
    o_ref[...] = y.astype(o_ref.dtype)


# ------------------------- layout helpers (XLA side) ------------------------


def to_grid(act, pad, min_rows, extra_tiles):
    """(C, N, Hs, Ws) activation -> flat lane-dense bf16 grid (C, L) + geometry.

    Rows of the zero-padded image (Hg = Hs + 2*pad) are stacked over images
    and flattened row-major with padded row width Wl (multiple of 128).
    `extra_tiles` trailing zero tiles let a consuming conv read its next-tile
    halo without going out of bounds.
    """
    C, N, Hs, Ws = act.shape
    Hg, Wg = Hs + 2 * pad, Ws + 2 * pad
    Wl = _round_up(Wg, LANE)
    rows = max(min_rows, TM_TARGET // Wl)
    T = rows * Wl
    base_nt = pl.cdiv(N * Hg * Wl, T)
    L = (base_nt + extra_tiles) * T
    act = jnp.pad(act.astype(jnp.bfloat16),
                  ((0, 0), (0, 0), (pad, pad), (pad, Wl - Ws - pad)))
    flat = act.reshape(C, N * Hg * Wl)
    flat = jnp.pad(flat, ((0, 0), (0, L - N * Hg * Wl)))
    return flat, (N, Hg, Wg, Wl, T), base_nt


def from_grid(flat, geom, OH, OW):
    """Flat grid (C, L) -> (C, N, OH, OW) by cropping the valid region."""
    N, Hg, _, Wl, _ = geom
    C = flat.shape[0]
    x = flat[:, :N * Hg * Wl].reshape(C, N, Hg, Wl)
    return x[:, :, :OH, :OW]


# ----------------------------- Pallas wrappers ------------------------------


def conv_grid(x_grid, geom, weight, bias, n_tiles, valid_hw=None):
    """Fused kxk conv (+bias, +BN batch-statistic partials) on a flat grid.

    x_grid : (Ci, L_in) bf16 with L_in >= (n_tiles + 1) * T (halo tile).
    weight : (Co, Ci, kh, kw) f32.   Returns (out bf16, sum, sumsq, OH, OW).
    """
    N, Hg, Wg, Wl, T = geom
    Co, Ci, kh, kw = weight.shape
    K = Ci * kh * kw
    L_out = n_tiles * T
    Hin, Win = valid_hw if valid_hw is not None else (Hg, Wg)
    OH, OW = Hin - kh + 1, Win - kw + 1
    assert x_grid.shape[0] == Ci
    assert x_grid.shape[1] >= (n_tiles + 1) * T        # halo tile available
    assert (kh - 1) * Wl + (kw - 1) <= T               # halo fits one tile

    # K ordering (di, dj, ci) to match the in-kernel tap gathering order.
    w_mat = jnp.transpose(weight, (0, 2, 3, 1)).reshape(Co, K).astype(jnp.bfloat16)
    b_col = bias.reshape(Co, 1).astype(jnp.float32)

    # Validity mask over output grid positions (stats only); constant-folded.
    pos = jnp.arange(L_out, dtype=jnp.int32)
    row = pos // Wl
    valid = (row < N * Hg) & ((row % Hg) < OH) & ((pos % Wl) < OW)
    mask = valid.astype(jnp.bfloat16).reshape(1, L_out)

    out, st = pl.pallas_call(
        functools.partial(_conv_grid_kernel, kh=kh, kw=kw, wl=Wl),
        out_shape=(
            jax.ShapeDtypeStruct((Co, L_out), jnp.bfloat16),
            jax.ShapeDtypeStruct((Co, n_tiles * LANE), jnp.float32),
        ),
        grid=(n_tiles,),
        in_specs=[
            pl.BlockSpec((Co, K), lambda i: (0, 0)),       # weights (resident)
            pl.BlockSpec((Co, 1), lambda i: (0, 0)),       # bias (resident)
            pl.BlockSpec((Ci, T), lambda i: (0, i)),       # this tile
            pl.BlockSpec((Ci, T), lambda i: (0, i + 1)),   # halo: next tile
            pl.BlockSpec((1, T), lambda i: (0, i)),        # validity mask
        ],
        out_specs=(
            pl.BlockSpec((Co, T), lambda i: (0, i)),
            pl.BlockSpec((Co, LANE), lambda i: (0, i)),    # per-tile partials
        ),
        compiler_params=pltpu.CompilerParams(dimension_semantics=("parallel",)),
    )(w_mat, b_col, x_grid, x_grid, mask)

    st = st.reshape(Co, n_tiles, LANE)
    return out, st[:, :, 0].sum(axis=1), st[:, :, 1].sum(axis=1), OH, OW


def matmul_bias(w, x, b, *, tile=TM_TARGET):
    """(R,K) @ (K,M) + b[R] -> (R, Mp) bf16; in-kernel cast, M-tiled grid."""
    R, K = w.shape
    M = x.shape[1]
    t = min(tile, _round_up(M, LANE))
    Mp = _round_up(M, t)
    if Mp != M:
        x = jnp.pad(x, ((0, 0), (0, Mp - M)))
    return pl.pallas_call(
        _mm_bias_kernel,
        out_shape=jax.ShapeDtypeStruct((R, Mp), jnp.bfloat16),
        grid=(Mp // t,),
        in_specs=[
            pl.BlockSpec((R, K), lambda i: (0, 0)),
            pl.BlockSpec((K, t), lambda i: (0, i)),
            pl.BlockSpec((R, 1), lambda i: (0, 0)),
        ],
        out_specs=pl.BlockSpec((R, t), lambda i: (0, i)),
        compiler_params=pltpu.CompilerParams(dimension_semantics=("parallel",)),
    )(w.astype(jnp.bfloat16), x, b.reshape(R, 1).astype(jnp.float32))


def scale_shift(x, a, b, *, relu, tile, out_dtype=jnp.float32):
    """Per-channel affine (+ReLU) on a (C, L) activation; f32 epilogue math."""
    C, L = x.shape
    assert L % tile == 0
    return pl.pallas_call(
        functools.partial(_scale_shift_kernel, relu=relu),
        out_shape=jax.ShapeDtypeStruct((C, L), out_dtype),
        grid=(L // tile,),
        in_specs=[
            pl.BlockSpec((C, tile), lambda i: (0, i)),
            pl.BlockSpec((C, 1), lambda i: (0, 0)),
            pl.BlockSpec((C, 1), lambda i: (0, 0)),
        ],
        out_specs=pl.BlockSpec((C, tile), lambda i: (0, i)),
        compiler_params=pltpu.CompilerParams(dimension_semantics=("parallel",)),
    )(x, a.reshape(C, 1).astype(jnp.float32), b.reshape(C, 1).astype(jnp.float32))


# ------------------------------ building blocks ------------------------------


def conv_transpose2d(x, weight, bias, stride):
    """PyTorch ConvTranspose2d (padding 0).  Returns (Co, N, OH, OW) bf16."""
    N, Ci, H, W = x.shape
    _, Co, kh, kw = weight.shape
    if kh == stride and kw == stride:
        # Non-overlapping windows: per-pixel matmul + depth-to-space relayout.
        x_cm = jnp.transpose(x, (1, 0, 2, 3)).reshape(Ci, N * H * W)
        w_mat = jnp.transpose(weight, (1, 2, 3, 0)).reshape(Co * kh * kw, Ci)
        b_rows = jnp.repeat(bias, kh * kw)
        out = matmul_bias(w_mat, x_cm, b_rows)[:, :N * H * W]
        out = out.reshape(Co, kh, kw, N, H, W)
        # TODO(synk): fuse this depth-to-space + the downstream concat into the
        # conv1 patch gather instead of an XLA relayout pass.
        out = jnp.transpose(out, (0, 3, 4, 1, 5, 2)).reshape(Co, N, H * kh, W * kw)
        return out
    # General (overlapping) fallback: zero-dilate + full-padding conv with the
    # flipped / channel-swapped kernel, reusing the fused grid-conv kernel.
    Hd, Wd = (H - 1) * stride + 1, (W - 1) * stride + 1
    xd = jnp.zeros((Ci, N, Hd, Wd), jnp.float32)
    xd = xd.at[:, :, ::stride, ::stride].set(jnp.transpose(x, (1, 0, 2, 3)))
    kern = jnp.flip(jnp.transpose(weight, (1, 0, 2, 3)), axis=(2, 3))
    grid_x, geom, base_nt = to_grid(xd, kh - 1, kh, 1)
    out_grid, _, _, OH, OW = conv_grid(grid_x, geom, kern, bias, base_nt)
    return from_grid(out_grid, geom, OH, OW)


def _bn_affine(s, q, m, gamma, beta):
    # Training-mode BatchNorm (batch mean, biased variance) -> y = a*x + b.
    # TODO(synk): shifted / Welford accumulation for very large m.
    mean = s / m
    var = jnp.maximum(q / m - mean * mean, 0.0)
    a = gamma * jax.lax.rsqrt(var + EPS)
    b = beta - mean * a
    return a, b


# ------------------------------- _Up forward -------------------------------


def up_forward(x, y, p, *, stride, padding1, padding2):
    N = x.shape[0]

    # 1) x = self._convtrans(x)
    xu = conv_transpose2d(x, p["tw"], p["tb"], stride)          # (Co, N, H1, W1)
    H1, W1 = xu.shape[2], xu.shape[3]

    # 2) center-crop skip connection + channel concat (single XLA relayout)
    dY = (y.shape[2] - H1) // 2
    dX = (y.shape[3] - W1) // 2
    y_c = jnp.transpose(y, (1, 0, 2, 3))[:, :, dY:dY + H1, dX:dX + W1]
    cat = jnp.concatenate([xu, y_c.astype(xu.dtype)], axis=0)   # (C1, N, H1, W1)

    # 3) conv1 (+ fused BN1 batch statistics) on the flat grid
    grid0, geom, base_nt = to_grid(cat, padding1, 3, 2)
    c1, s1, q1, OH1, OW1 = conv_grid(grid0, geom, p["w1"], p["b1"], base_nt + 1)
    a1, b1 = _bn_affine(s1, q1, N * OH1 * OW1, p["g1"], p["be1"])

    if padding2 == 0:
        # Fold BN1's affine into conv2's weights/bias (exact: linear, no pad),
        # and run conv2 directly on conv1's grid (no crop / repack pass).
        w2 = p["w2"] * a1[None, :, None, None]
        bias2 = p["b2"] + jnp.einsum("oikl,i->o", p["w2"], b1)
        c2, s2, q2, OH2, OW2 = conv_grid(c1, geom, w2, bias2, base_nt,
                                         valid_hw=(OH1, OW1))
        geom2 = geom
    else:
        # Apply BN1 explicitly, repack with zero padding, then conv2.
        z1 = scale_shift(c1, a1, b1, relu=False, tile=geom[4],
                         out_dtype=jnp.bfloat16)
        x2 = from_grid(z1, geom, OH1, OW1)
        grid2, geom2, nt2 = to_grid(x2, padding2, 3, 1)
        c2, s2, q2, OH2, OW2 = conv_grid(grid2, geom2, p["w2"], p["b2"], nt2)

    a2, b2 = _bn_affine(s2, q2, N * OH2 * OW2, p["g2"], p["be2"])

    # 4) BN2 + ReLU in one fused pass; crop back to NCHW at the boundary
    out_grid = scale_shift(c2, a2, b2, relu=True, tile=geom2[4])
    out = from_grid(out_grid, geom2, OH2, OW2)                  # (Co, N, OH2, OW2)
    return jnp.transpose(out, (1, 0, 2, 3))


# ------------------------------ f32 reference -------------------------------


def ref_forward(x, y, p, stride, padding1, padding2):
    hi = jax.lax.Precision.HIGHEST
    k = p["tw"].shape[2]
    kern_t = jnp.flip(jnp.transpose(p["tw"], (1, 0, 2, 3)), axis=(2, 3))
    xu = jax.lax.conv_general_dilated(
        x, kern_t, window_strides=(1, 1),
        padding=[(k - 1, k - 1), (k - 1, k - 1)],
        lhs_dilation=(stride, stride),
        dimension_numbers=("NCHW", "OIHW", "NCHW"), precision=hi,
    ) + p["tb"][None, :, None, None]
    H1, W1 = xu.shape[2], xu.shape[3]
    dY = (y.shape[2] - H1) // 2
    dX = (y.shape[3] - W1) // 2
    cat = jnp.concatenate([xu, y[:, :, dY:dY + H1, dX:dX + W1]], axis=1)

    def conv_bn(z, w, b, g, be, pad, relu):
        c = jax.lax.conv_general_dilated(
            z, w, (1, 1), padding=[(pad, pad), (pad, pad)],
            dimension_numbers=("NCHW", "OIHW", "NCHW"), precision=hi,
        ) + b[None, :, None, None]
        mu = c.mean(axis=(0, 2, 3))
        var = c.var(axis=(0, 2, 3))
        o = (c - mu[None, :, None, None]) * (
            g * jax.lax.rsqrt(var + EPS))[None, :, None, None] + be[None, :, None, None]
        return jnp.maximum(o, 0.0) if relu else o

    z = conv_bn(cat, p["w1"], p["b1"], p["g1"], p["be1"], padding1, False)
    return conv_bn(z, p["w2"], p["b2"], p["g2"], p["be2"], padding2, True)


# ----------------------------------- main -----------------------------------

if __name__ == "__main__":
    # module hyper-parameters
    in_channels, out_channels = 8, 4
    kernel_size, stride = 2, 2
    padding1, padding2 = 0, 0

    key = jax.random.PRNGKey(0)
    ks = jax.random.split(key, 12)

    params = {
        "tw": 0.1 * jax.random.normal(ks[0], (in_channels, out_channels, kernel_size, kernel_size), jnp.float32),
        "tb": 0.1 * jax.random.normal(ks[1], (out_channels,), jnp.float32),
        "w1": 0.1 * jax.random.normal(ks[2], (out_channels, in_channels, 3, 3), jnp.float32),
        "b1": 0.1 * jax.random.normal(ks[3], (out_channels,), jnp.float32),
        "g1": 1.0 + 0.1 * jax.random.normal(ks[4], (out_channels,), jnp.float32),
        "be1": 0.1 * jax.random.normal(ks[5], (out_channels,), jnp.float32),
        "w2": 0.1 * jax.random.normal(ks[6], (out_channels, out_channels, 3, 3), jnp.float32),
        "b2": 0.1 * jax.random.normal(ks[7], (out_channels,), jnp.float32),
        "g2": 1.0 + 0.1 * jax.random.normal(ks[8], (out_channels,), jnp.float32),
        "be2": 0.1 * jax.random.normal(ks[9], (out_channels,), jnp.float32),
    }

    # inputs (NCHW, like PyTorch)
    x = jax.random.normal(ks[10], (2, in_channels, 8, 8), jnp.float32)
    y = jax.random.normal(ks[11], (2, out_channels, 20, 20), jnp.float32)

    fwd = jax.jit(functools.partial(
        up_forward, stride=stride, padding1=padding1, padding2=padding2))
    out = fwd(x, y, params)
    jax.block_until_ready(out)

    # convtrans: 8x8 -> 16x16; crop y -> 16x16; concat -> 8 ch; two valid 3x3 convs
    assert out.shape == (2, out_channels, 12, 12), out.shape
    assert bool(jnp.all(out >= 0.0))          # final ReLU
    assert bool(jnp.all(jnp.isfinite(out)))

    # numerical sanity check vs. an f32 XLA reference (bf16 kernel path)
    ref = ref_forward(x, y, params, stride, padding1, padding2)
    err = float(jnp.max(jnp.abs(out - ref)))
    assert err < 0.2, f"max abs err vs f32 reference: {err}"

    print("KERNEL_OK")
</pallas_src>

<mosaic_0001>
module attributes {stable_mosaic.version = 11 : i64} {
  func.func @_mm_bias_kernel(%arg0: i32, %arg1: memref<16x8xbf16, #tpu.memory_space<vmem>>, %arg2: memref<8x128xf32, #tpu.memory_space<vmem>>, %arg3: memref<16x1xf32, #tpu.memory_space<vmem>>, %arg4: memref<16x128xbf16, #tpu.memory_space<vmem>>) attributes {dimension_semantics = [#tpu.dimension_semantics<parallel>], iteration_bounds = array<i64: 1>, scalar_prefetch = 0 : i64, scratch_operands = 0 : i64, tpu.core_type = #tpu.core_type<tc>, window_params = [{pipeline_mode = #tpu.pipeline_mode<synchronous>, transform_indices = @transform_0, window_bounds = array<i64: 16, 8>}, {transform_indices = @transform_1, window_bounds = array<i64: 8, 128>}, {pipeline_mode = #tpu.pipeline_mode<synchronous>, transform_indices = @transform_2, window_bounds = array<i64: 16, 1>}, {transform_indices = @transform_3, window_bounds = array<i64: 16, 128>}]} {
    %c0 = arith.constant 0 : index
    %c0_0 = arith.constant 0 : index
    %0 = vector.load %arg2[%c0, %c0_0] : memref<8x128xf32, #tpu.memory_space<vmem>>, vector<8x128xf32>
    %1 = arith.truncf %0 : vector<8x128xf32> to vector<8x128xbf16>
    %c0_1 = arith.constant 0 : index
    %c0_2 = arith.constant 0 : index
    %2 = vector.load %arg1[%c0_1, %c0_2] : memref<16x8xbf16, #tpu.memory_space<vmem>>, vector<16x8xbf16>
    %cst = arith.constant dense<0.000000e+00> : vector<16x128xf32>
    %3 = tpu.matmul %2, %1, %cst {dimension_numbers = #tpu.dot_dimension_numbers<[1], [0], [0], [1], [0, 0, 1, 1], [], []>} : vector<16x8xbf16>, vector<8x128xbf16>, vector<16x128xf32> -> vector<16x128xf32>
    %c0_3 = arith.constant 0 : index
    %c0_4 = arith.constant 0 : index
    %4 = vector.load %arg3[%c0_3, %c0_4] : memref<16x1xf32, #tpu.memory_space<vmem>>, vector<16x1xf32>
    %5 = vector.broadcast %4 : vector<16x1xf32> to vector<16x128xf32>
    %6 = arith.addf %3, %5 : vector<16x128xf32>
    %7 = arith.truncf %6 : vector<16x128xf32> to vector<16x128xbf16>
    %c0_5 = arith.constant 0 : index
    %c0_6 = arith.constant 0 : index
    %8 = vector.load %arg4[%c0_5, %c0_6] : memref<16x128xbf16, #tpu.memory_space<vmem>>, vector<16x128xbf16>
    tpu.vector_store %arg4[%c0_5, %c0_6], %7 {strides = array<i32>} : memref<16x128xbf16, #tpu.memory_space<vmem>>, vector<16x128xbf16>,
    return
  }
  func.func @transform_0(%arg0: i32) -> (i32, i32) {
    %c0_i32 = arith.constant 0 : i32
    %c0_i32_0 = arith.constant 0 : i32
    %c0_i32_1 = arith.constant 0 : i32
    return %c0_i32, %c0_i32_0 : i32, i32
  }
  func.func @transform_1(%arg0: i32) -> (i32, i32) {
    %c0_i32 = arith.constant 0 : i32
    %c0_i32_0 = arith.constant 0 : i32
    return %c0_i32, %arg0 : i32, i32
  }
  func.func @transform_2(%arg0: i32) -> (i32, i32) {
    %c0_i32 = arith.constant 0 : i32
    %c0_i32_0 = arith.constant 0 : i32
    %c0_i32_1 = arith.constant 0 : i32
    return %c0_i32, %c0_i32_0 : i32, i32
  }
  func.func @transform_3(%arg0: i32) -> (i32, i32) {
    %c0_i32 = arith.constant 0 : i32
    %c0_i32_0 = arith.constant 0 : i32
    return %c0_i32, %arg0 : i32, i32
  }
}

module attributes {stable_mosaic.version = 11 : i64} {
  func.func @_conv_grid_kernel(%arg0: i32, %arg1: memref<4x72xbf16, #tpu.memory_space<vmem>>, %arg2: memref<4x1xf32, #tpu.memory_space<vmem>>, %arg3: memref<8x1024xbf16, #tpu.memory_space<vmem>>, %arg4: memref<8x1024xbf16, #tpu.memory_space<vmem>>, %arg5: memref<1x1024xbf16, #tpu.memory_space<vmem>>, %arg6: memref<4x1024xbf16, #tpu.memory_space<vmem>>, %arg7: memref<4x128xf32, #tpu.memory_space<vmem>>) attributes {dimension_semantics = [#tpu.dimension_semantics<parallel>], iteration_bounds = array<i64: 5>, scalar_prefetch = 0 : i64, scratch_operands = 0 : i64, tpu.core_type = #tpu.core_type<tc>, window_params = [{pipeline_mode = #tpu.pipeline_mode<synchronous>, transform_indices = @transform_0, window_bounds = array<i64: 4, 72>}, {pipeline_mode = #tpu.pipeline_mode<synchronous>, transform_indices = @transform_1, window_bounds = array<i64: 4, 1>}, {transform_indices = @transform_2, window_bounds = array<i64: 8, 1024>}, {transform_indices = @transform_3, window_bounds = array<i64: 8, 1024>}, {transform_indices = @transform_4, window_bounds = array<i64: 1, 1024>}, {transform_indices = @transform_5, window_bounds = array<i64: 4, 1024>}, {transform_indices = @transform_6, window_bounds = array<i64: 4, 128>}]} {
    %c0 = arith.constant 0 : index
    %c0_0 = arith.constant 0 : index
    %0 = vector.load %arg3[%c0, %c0_0] : memref<8x1024xbf16, #tpu.memory_space<vmem>>, vector<8x1024xbf16>
    %c0_1 = arith.constant 0 : index
    %c0_2 = arith.constant 0 : index
    %1 = vector.load %arg4[%c0_1, %c0_2] : memref<8x1024xbf16, #tpu.memory_space<vmem>>, vector<8x1024xbf16>
    %2 = tpu.concatenate %0, %1 in 1 : vector<8x1024xbf16>, vector<8x1024xbf16> -> vector<8x2048xbf16>
    %3 = vector.extract_strided_slice %2 {offsets = [0, 0], sizes = [8, 1024], strides = [1, 1]} : vector<8x2048xbf16> to vector<8x1024xbf16>
    %4 = vector.extract_strided_slice %2 {offsets = [0, 1], sizes = [8, 1024], strides = [1, 1]} : vector<8x2048xbf16> to vector<8x1024xbf16>
    %5 = vector.extract_strided_slice %2 {offsets = [0, 2], sizes = [8, 1024], strides = [1, 1]} : vector<8x2048xbf16> to vector<8x1024xbf16>
    %6 = vector.extract_strided_slice %2 {offsets = [0, 128], sizes = [8, 1024], strides = [1, 1]} : vector<8x2048xbf16> to vector<8x1024xbf16>
    %7 = vector.extract_strided_slice %2 {offsets = [0, 129], sizes = [8, 1024], strides = [1, 1]} : vector<8x2048xbf16> to vector<8x1024xbf16>
    %8 = vector.extract_strided_slice %2 {offsets = [0, 130], sizes = [8, 1024], strides = [1, 1]} : vector<8x2048xbf16> to vector<8x1024xbf16>
    %9 = vector.extract_strided_slice %2 {offsets = [0, 256], sizes = [8, 1024], strides = [1, 1]} : vector<8x2048xbf16> to vector<8x1024xbf16>
    %10 = vector.extract_strided_slice %2 {offsets = [0, 257], sizes = [8, 1024], strides = [1, 1]} : vector<8x2048xbf16> to vector<8x1024xbf16>
    %11 = vector.extract_strided_slice %2 {offsets = [0, 258], sizes = [8, 1024], strides = [1, 1]} : vector<8x2048xbf16> to vector<8x1024xbf16>
    %12 = tpu.concatenate %3, %4, %5, %6, %7, %8, %9, %10, %11 in 0 : vector<8x1024xbf16>, vector<8x1024xbf16>, vector<8x1024xbf16>, vector<8x1024xbf16>, vector<8x1024xbf16>, vector<8x1024xbf16>, vector<8x1024xbf16>, vector<8x1024xbf16>, vector<8x1024xbf16> -> vector<72x1024xbf16>
    %c0_3 = arith.constant 0 : index
    %c0_4 = arith.constant 0 : index
    %13 = vector.load %arg1[%c0_3, %c0_4] : memref<4x72xbf16, #tpu.memory_space<vmem>>, vector<4x72xbf16>
    %cst = arith.constant dense<0.000000e+00> : vector<4x1024xf32>
    %14 = tpu.matmul %13, %12, %cst {dimension_numbers = #tpu.dot_dimension_numbers<[1], [0], [0], [1], [0, 0, 1, 1], [], []>} : vector<4x72xbf16>, vector<72x1024xbf16>, vector<4x1024xf32> -> vector<4x1024xf32>
    %c0_5 = arith.constant 0 : index
    %c0_6 = arith.constant 0 : index
    %15 = vector.load %arg2[%c0_5, %c0_6] : memref<4x1xf32, #tpu.memory_space<vmem>>, vector<4x1xf32>
    %16 = vector.broadcast %15 : vector<4x1xf32> to vector<4x1024xf32>
    %17 = arith.addf %14, %16 : vector<4x1024xf32>
    %18 = arith.truncf %17 : vector<4x1024xf32> to vector<4x1024xbf16>
    %c0_7 = arith.constant 0 : index
    %c0_8 = arith.constant 0 : index
    %19 = vector.load %arg6[%c0_7, %c0_8] : memref<4x1024xbf16, #tpu.memory_space<vmem>>, vector<4x1024xbf16>
    tpu.vector_store %arg6[%c0_7, %c0_8], %18 {strides = array<i32>} : memref<4x1024xbf16, #tpu.memory_space<vmem>>, vector<4x1024xbf16>,
    %c0_9 = arith.constant 0 : index
    %c0_10 = arith.constant 0 : index
    %20 = vector.load %arg5[%c0_9, %c0_10] : memref<1x1024xbf16, #tpu.memory_space<vmem>>, vector<1x1024xbf16>
    %21 = arith.extf %20 : vector<1x1024xbf16> to vector<1x1024xf32>
    %22 = vector.broadcast %21 : vector<1x1024xf32> to vector<4x1024xf32>
    %23 = arith.mulf %17, %22 : vector<4x1024xf32>
    %cst_11 = arith.constant dense<0.000000e+00> : vector<4xf32>
    %24 = vector.multi_reduction <add>, %23, %cst_11 [1] : vector<4x1024xf32> to vector<4xf32>
    %25 = vector.shape_cast %24 : vector<4xf32> to vector<4x1xf32>
    %26 = arith.mulf %23, %23 : vector<4x1024xf32>
    %cst_12 = arith.constant dense<0.000000e+00> : vector<4xf32>
    %27 = vector.multi_reduction <add>, %26, %cst_12 [1] : vector<4x1024xf32> to vector<4xf32>
    %28 = vector.shape_cast %27 : vector<4xf32> to vector<4x1xf32>
    %cst_13 = arith.constant 0.000000e+00 : f32
    %29 = vector.broadcast %cst_13 : f32 to vector<4x126xf32>
    %30 = tpu.concatenate %25, %28, %29 in 1 : vector<4x1xf32>, vector<4x1xf32>, vector<4x126xf32> -> vector<4x128xf32>
    %c0_14 = arith.constant 0 : index
    %c0_15 = arith.constant 0 : index
    %31 = vector.load %arg7[%c0_14, %c0_15] : memref<4x128xf32, #tpu.memory_space<vmem>>, vector<4x128xf32>
    tpu.vector_store %arg7[%c0_14, %c0_15], %30 {strides = array<i32>} : memref<4x128xf32, #tpu.memory_space<vmem>>, vector<4x128xf32>,
    return
  }
  func.func @transform_0(%arg0: i32) -> (i32, i32) {
    %c0_i32 = arith.constant 0 : i32
    %c0_i32_0 = arith.constant 0 : i32
    %c0_i32_1 = arith.constant 0 : i32
    return %c0_i32, %c0_i32_0 : i32, i32
  }
  func.func @transform_1(%arg0: i32) -> (i32, i32) {
    %c0_i32 = arith.constant 0 : i32
    %c0_i32_0 = arith.constant 0 : i32
    %c0_i32_1 = arith.constant 0 : i32
    return %c0_i32, %c0_i32_0 : i32, i32
  }
  func.func @transform_2(%arg0: i32) -> (i32, i32) {
    %c0_i32 = arith.constant 0 : i32
    %c0_i32_0 = arith.constant 0 : i32
    return %c0_i32, %arg0 : i32, i32
  }
  func.func @transform_3(%arg0: i32) -> (i32, i32) {
    %c1_i32 = arith.constant 1 : i32
    %0 = arith.addi %arg0, %c1_i32 : i32
    %c0_i32 = arith.constant 0 : i32
    %c0_i32_0 = arith.constant 0 : i32
    return %c0_i32, %0 : i32, i32
  }
  func.func @transform_4(%arg0: i32) -> (i32, i32) {
    %c0_i32 = arith.constant 0 : i32
    %c0_i32_0 = arith.constant 0 : i32
    return %c0_i32, %arg0 : i32, i32
  }
  func.func @transform_5(%arg0: i32) -> (i32, i32) {
    %c0_i32 = arith.constant 0 : i32
    %c0_i32_0 = arith.constant 0 : i32
    return %c0_i32, %arg0 : i32, i32
  }
  func.func @transform_6(%arg0: i32) -> (i32, i32) {
    %c0_i32 = arith.constant 0 : i32
    %c0_i32_0 = arith.constant 0 : i32
    return %c0_i32, %arg0 : i32, i32
  }
}

module attributes {stable_mosaic.version = 11 : i64} {
  func.func @_conv_grid_kernel(%arg0: i32, %arg1: memref<4x36xbf16, #tpu.memory_space<vmem>>, %arg2: memref<4x1xf32, #tpu.memory_space<vmem>>, %arg3: memref<4x1024xbf16, #tpu.memory_space<vmem>>, %arg4: memref<4x1024xbf16, #tpu.memory_space<vmem>>, %arg5: memref<1x1024xbf16, #tpu.memory_space<vmem>>, %arg6: memref<4x1024xbf16, #tpu.memory_space<vmem>>, %arg7: memref<4x128xf32, #tpu.memory_space<vmem>>) attributes {dimension_semantics = [#tpu.dimension_semantics<parallel>], iteration_bounds = array<i64: 4>, scalar_prefetch = 0 : i64, scratch_operands = 0 : i64, tpu.core_type = #tpu.core_type<tc>, window_params = [{pipeline_mode = #tpu.pipeline_mode<synchronous>, transform_indices = @transform_0, window_bounds = array<i64: 4, 36>}, {pipeline_mode = #tpu.pipeline_mode<synchronous>, transform_indices = @transform_1, window_bounds = array<i64: 4, 1>}, {transform_indices = @transform_2, window_bounds = array<i64: 4, 1024>}, {transform_indices = @transform_3, window_bounds = array<i64: 4, 1024>}, {transform_indices = @transform_4, window_bounds = array<i64: 1, 1024>}, {transform_indices = @transform_5, window_bounds = array<i64: 4, 1024>}, {transform_indices = @transform_6, window_bounds = array<i64: 4, 128>}]} {
    %c0 = arith.constant 0 : index
    %c0_0 = arith.constant 0 : index
    %0 = vector.load %arg3[%c0, %c0_0] : memref<4x1024xbf16, #tpu.memory_space<vmem>>, vector<4x1024xbf16>
    %c0_1 = arith.constant 0 : index
    %c0_2 = arith.constant 0 : index
    %1 = vector.load %arg4[%c0_1, %c0_2] : memref<4x1024xbf16, #tpu.memory_space<vmem>>, vector<4x1024xbf16>
    %2 = tpu.concatenate %0, %1 in 1 : vector<4x1024xbf16>, vector<4x1024xbf16> -> vector<4x2048xbf16>
    %3 = vector.extract_strided_slice %2 {offsets = [0, 0], sizes = [4, 1024], strides = [1, 1]} : vector<4x2048xbf16> to vector<4x1024xbf16>
    %4 = vector.extract_strided_slice %2 {offsets = [0, 1], sizes = [4, 1024], strides = [1, 1]} : vector<4x2048xbf16> to vector<4x1024xbf16>
    %5 = vector.extract_strided_slice %2 {offsets = [0, 2], sizes = [4, 1024], strides = [1, 1]} : vector<4x2048xbf16> to vector<4x1024xbf16>
    %6 = vector.extract_strided_slice %2 {offsets = [0, 128], sizes = [4, 1024], strides = [1, 1]} : vector<4x2048xbf16> to vector<4x1024xbf16>
    %7 = vector.extract_strided_slice %2 {offsets = [0, 129], sizes = [4, 1024], strides = [1, 1]} : vector<4x2048xbf16> to vector<4x1024xbf16>
    %8 = vector.extract_strided_slice %2 {offsets = [0, 130], sizes = [4, 1024], strides = [1, 1]} : vector<4x2048xbf16> to vector<4x1024xbf16>
    %9 = vector.extract_strided_slice %2 {offsets = [0, 256], sizes = [4, 1024], strides = [1, 1]} : vector<4x2048xbf16> to vector<4x1024xbf16>
    %10 = vector.extract_strided_slice %2 {offsets = [0, 257], sizes = [4, 1024], strides = [1, 1]} : vector<4x2048xbf16> to vector<4x1024xbf16>
    %11 = vector.extract_strided_slice %2 {offsets = [0, 258], sizes = [4, 1024], strides = [1, 1]} : vector<4x2048xbf16> to vector<4x1024xbf16>
    %12 = tpu.concatenate %3, %4, %5, %6, %7, %8, %9, %10, %11 in 0 : vector<4x1024xbf16>, vector<4x1024xbf16>, vector<4x1024xbf16>, vector<4x1024xbf16>, vector<4x1024xbf16>, vector<4x1024xbf16>, vector<4x1024xbf16>, vector<4x1024xbf16>, vector<4x1024xbf16> -> vector<36x1024xbf16>
    %c0_3 = arith.constant 0 : index
    %c0_4 = arith.constant 0 : index
    %13 = vector.load %arg1[%c0_3, %c0_4] : memref<4x36xbf16, #tpu.memory_space<vmem>>, vector<4x36xbf16>
    %cst = arith.constant dense<0.000000e+00> : vector<4x1024xf32>
    %14 = tpu.matmul %13, %12, %cst {dimension_numbers = #tpu.dot_dimension_numbers<[1], [0], [0], [1], [0, 0, 1, 1], [], []>} : vector<4x36xbf16>, vector<36x1024xbf16>, vector<4x1024xf32> -> vector<4x1024xf32>
    %c0_5 = arith.constant 0 : index
    %c0_6 = arith.constant 0 : index
    %15 = vector.load %arg2[%c0_5, %c0_6] : memref<4x1xf32, #tpu.memory_space<vmem>>, vector<4x1xf32>
    %16 = vector.broadcast %15 : vector<4x1xf32> to vector<4x1024xf32>
    %17 = arith.addf %14, %16 : vector<4x1024xf32>
    %18 = arith.truncf %17 : vector<4x1024xf32> to vector<4x1024xbf16>
    %c0_7 = arith.constant 0 : index
    %c0_8 = arith.constant 0 : index
    %19 = vector.load %arg6[%c0_7, %c0_8] : memref<4x1024xbf16, #tpu.memory_space<vmem>>, vector<4x1024xbf16>
    tpu.vector_store %arg6[%c0_7, %c0_8], %18 {strides = array<i32>} : memref<4x1024xbf16, #tpu.memory_space<vmem>>, vector<4x1024xbf16>,
    %c0_9 = arith.constant 0 : index
    %c0_10 = arith.constant 0 : index
    %20 = vector.load %arg5[%c0_9, %c0_10] : memref<1x1024xbf16, #tpu.memory_space<vmem>>, vector<1x1024xbf16>
    %21 = arith.extf %20 : vector<1x1024xbf16> to vector<1x1024xf32>
    %22 = vector.broadcast %21 : vector<1x1024xf32> to vector<4x1024xf32>
    %23 = arith.mulf %17, %22 : vector<4x1024xf32>
    %cst_11 = arith.constant dense<0.000000e+00> : vector<4xf32>
    %24 = vector.multi_reduction <add>, %23, %cst_11 [1] : vector<4x1024xf32> to vector<4xf32>
    %25 = vector.shape_cast %24 : vector<4xf32> to vector<4x1xf32>
    %26 = arith.mulf %23, %23 : vector<4x1024xf32>
    %cst_12 = arith.constant dense<0.000000e+00> : vector<4xf32>
    %27 = vector.multi_reduction <add>, %26, %cst_12 [1] : vector<4x1024xf32> to vector<4xf32>
    %28 = vector.shape_cast %27 : vector<4xf32> to vector<4x1xf32>
    %cst_13 = arith.constant 0.000000e+00 : f32
    %29 = vector.broadcast %cst_13 : f32 to vector<4x126xf32>
    %30 = tpu.concatenate %25, %28, %29 in 1 : vector<4x1xf32>, vector<4x1xf32>, vector<4x126xf32> -> vector<4x128xf32>
    %c0_14 = arith.constant 0 : index
    %c0_15 = arith.constant 0 : index
    %31 = vector.load %arg7[%c0_14, %c0_15] : memref<4x128xf32, #tpu.memory_space<vmem>>, vector<4x128xf32>
    tpu.vector_store %arg7[%c0_14, %c0_15], %30 {strides = array<i32>} : memref<4x128xf32, #tpu.memory_space<vmem>>, vector<4x128xf32>,
    return
  }
  func.func @transform_0(%arg0: i32) -> (i32, i32) {
    %c0_i32 = arith.constant 0 : i32
    %c0_i32_0 = arith.constant 0 : i32
    %c0_i32_1 = arith.constant 0 : i32
    return %c0_i32, %c0_i32_0 : i32, i32
  }
  func.func @transform_1(%arg0: i32) -> (i32, i32) {
    %c0_i32 = arith.constant 0 : i32
    %c0_i32_0 = arith.constant 0 : i32
    %c0_i32_1 = arith.constant 0 : i32
    return %c0_i32, %c0_i32_0 : i32, i32
  }
  func.func @transform_2(%arg0: i32) -> (i32, i32) {
    %c0_i32 = arith.constant 0 : i32
    %c0_i32_0 = arith.constant 0 : i32
    return %c0_i32, %arg0 : i32, i32
  }
  func.func @transform_3(%arg0: i32) -> (i32, i32) {
    %c1_i32 = arith.constant 1 : i32
    %0 = arith.addi %arg0, %c1_i32 : i32
    %c0_i32 = arith.constant 0 : i32
    %c0_i32_0 = arith.constant 0 : i32
    return %c0_i32, %0 : i32, i32
  }
  func.func @transform_4(%arg0: i32) -> (i32, i32) {
    %c0_i32 = arith.constant 0 : i32
    %c0_i32_0 = arith.constant 0 : i32
    return %c0_i32, %arg0 : i32, i32
  }
  func.func @transform_5(%arg0: i32) -> (i32, i32) {
    %c0_i32 = arith.constant 0 : i32
    %c0_i32_0 = arith.constant 0 : i32
    return %c0_i32, %arg0 : i32, i32
  }
  func.func @transform_6(%arg0: i32) -> (i32, i32) {
    %c0_i32 = arith.constant 0 : i32
    %c0_i32_0 = arith.constant 0 : i32
    return %c0_i32, %arg0 : i32, i32
  }
}

module attributes {stable_mosaic.version = 11 : i64} {
  func.func @_scale_shift_kernel(%arg0: i32, %arg1: memref<4x1024xbf16, #tpu.memory_space<vmem>>, %arg2: memref<4x1xf32, #tpu.memory_space<vmem>>, %arg3: memref<4x1xf32, #tpu.memory_space<vmem>>, %arg4: memref<4x1024xf32, #tpu.memory_space<vmem>>) attributes {dimension_semantics = [#tpu.dimension_semantics<parallel>], iteration_bounds = array<i64: 4>, scalar_prefetch = 0 : i64, scratch_operands = 0 : i64, tpu.core_type = #tpu.core_type<tc>, window_params = [{transform_indices = @transform_0, window_bounds = array<i64: 4, 1024>}, {pipeline_mode = #tpu.pipeline_mode<synchronous>, transform_indices = @transform_1, window_bounds = array<i64: 4, 1>}, {pipeline_mode = #tpu.pipeline_mode<synchronous>, transform_indices = @transform_2, window_bounds = array<i64: 4, 1>}, {transform_indices = @transform_3, window_bounds = array<i64: 4, 1024>}]} {
    %c0 = arith.constant 0 : index
    %c0_0 = arith.constant 0 : index
    %0 = vector.load %arg1[%c0, %c0_0] : memref<4x1024xbf16, #tpu.memory_space<vmem>>, vector<4x1024xbf16>
    %1 = arith.extf %0 : vector<4x1024xbf16> to vector<4x1024xf32>
    %c0_1 = arith.constant 0 : index
    %c0_2 = arith.constant 0 : index
    %2 = vector.load %arg2[%c0_1, %c0_2] : memref<4x1xf32, #tpu.memory_space<vmem>>, vector<4x1xf32>
    %3 = vector.broadcast %2 : vector<4x1xf32> to vector<4x1024xf32>
    %4 = arith.mulf %1, %3 : vector<4x1024xf32>
    %c0_3 = arith.constant 0 : index
    %c0_4 = arith.constant 0 : index
    %5 = vector.load %arg3[%c0_3, %c0_4] : memref<4x1xf32, #tpu.memory_space<vmem>>, vector<4x1xf32>
    %6 = vector.broadcast %5 : vector<4x1xf32> to vector<4x1024xf32>
    %7 = arith.addf %4, %6 : vector<4x1024xf32>
    %cst = arith.constant 0.000000e+00 : f32
    %8 = vector.broadcast %cst : f32 to vector<4x1024xf32>
    %9 = arith.maximumf %7, %8 : vector<4x1024xf32>
    %c0_5 = arith.constant 0 : index
    %c0_6 = arith.constant 0 : index
    %10 = vector.load %arg4[%c0_5, %c0_6] : memref<4x1024xf32, #tpu.memory_space<vmem>>, vector<4x1024xf32>
    tpu.vector_store %arg4[%c0_5, %c0_6], %9 {strides = array<i32>} : memref<4x1024xf32, #tpu.memory_space<vmem>>, vector<4x1024xf32>,
    return
  }
  func.func @transform_0(%arg0: i32) -> (i32, i32) {
    %c0_i32 = arith.constant 0 : i32
    %c0_i32_0 = arith.constant 0 : i32
    return %c0_i32, %arg0 : i32, i32
  }
  func.func @transform_1(%arg0: i32) -> (i32, i32) {
    %c0_i32 = arith.constant 0 : i32
    %c0_i32_0 = arith.constant 0 : i32
    %c0_i32_1 = arith.constant 0 : i32
    return %c0_i32, %c0_i32_0 : i32, i32
  }
  func.func @transform_2(%arg0: i32) -> (i32, i32) {
    %c0_i32 = arith.constant 0 : i32
    %c0_i32_0 = arith.constant 0 : i32
    %c0_i32_1 = arith.constant 0 : i32
    return %c0_i32, %c0_i32_0 : i32, i32
  }
  func.func @transform_3(%arg0: i32) -> (i32, i32) {
    %c0_i32 = arith.constant 0 : i32
    %c0_i32_0 = arith.constant 0 : i32
    return %c0_i32, %arg0 : i32, i32
  }
}

</mosaic_0001>

<bundles_post_ra>
// kernel: up_forward.4
= control target key start
LH: loop header
LB: loop body
LE: loop exit
PB: predicated region body
PF: predicated region fallthrough
CT: control target
= control target key end

     0   :  { %vm40_vm0 = vcmask 1043456   ;;  %v79_v1 = vmov 0   ;;  %vm36_vm1 = vcmask 64512   ;;  %s115_s1 = inlined_call_operand.vmem [shape: f32[8,128], index: 1, kind: input, shape index: {}]   ;;  %s116_s2 = inlined_call_operand.vmem [shape: f32[16,1], index: 2, kind: input, shape index: {}]   ;;  %s117_s0 = inlined_call_operand.vmem [shape: bf16[16,8], index: 0, kind: input, shape index: {}]   ;;  %s118_s3 = inlined_call_operand.vmem [shape: bf16[16,128], index: 3, kind: output, shape index: {}]  }
   0x1   :  { %v15_v0 = vld [vmem:[%s115_s1] sm:$0xff]  ;;  %78 = vset.pattern.permute.xlu0 %v79_v1  ;;  %v20_v6 = vld [vmem:[%s116_s2 + $0x8] sm:$0xff] }
   0x2   :  { %v19_v2 = vld [vmem:[%s116_s2] sm:$0xff]  ;;  %v16_v3 = vpack.c.bf16 %v15_v0, %v15_v0 }
   0x3   :  { %23 = vperm.xlu0 %78, %v19_v2   ;;  %v71_v5 = vld [vmem:[%s117_s0] sm:$0xff] }
   0x4   :  { %v42_v4 = vsel %vm40_vm0, %v16_v3, 0 }
   0x5   :  { %51 = vmatpush.bf16.msra.mxu0 %v42_v4 }
   0x8   :  { %70 = vmatmul.msk.bf16.vlgmr.msra.gmra.mxu0 %vm36_vm1, %v71_v5 }
   0xb   :  { %28 = vperm.xlu0 %78, %v20_v6  }
  0x75   :  { %v24_v7 = vpop.permute.xlu0 %23 }
  0x7d   :  { %v29_v9 = vpop.permute.xlu0 %28 }
  0x85   :  { %v53_v8 = vpop.f32.mrf.mxu0 }
  0x86   :  { %v54_v11 = vadd.f32 %v53_v8, %v24_v7 }
  0x8d   :  { %v55_v10 = vpop.f32.mrf.mxu0 }
  0x8e   :  { %v56_v12 = vadd.f32 %v55_v10, %v29_v9 }
  0x90   :  { %v75_v13 = vpack.c.bf16 %v56_v12, %v54_v11 }
  0x92   :  { %76 = vst [vmem:[%s118_s3] sm:$0xff] %v75_v13  }

// kernel: up_forward.5
= control target key start
LH: loop header
LB: loop body
LE: loop exit
PB: predicated region body
PF: predicated region fallthrough
CT: control target
= control target key end

     0   :  { %s1026_s21 = smov 0   ;;  %s1377_s0 = inlined_call_operand.vmem [shape: bf16[4,72], index: 0, kind: input, shape index: {}]   ;;  %s1378_s1 = inlined_call_operand.vmem [shape: f32[4,1], index: 1, kind: input, shape index: {}]   ;;  %s1379_s2 = inlined_call_operand.vmem [shape: bf16[8,6144], index: 2, kind: input, shape index: {}, may-alias: {2,3}]   ;;  %s1380_s3 = inlined_call_operand.vmem [shape: bf16[8,6144], index: 3, kind: input, shape index: {}, may-alias: {2,3}]   ;;  %s1381_s4 = inlined_call_operand.vmem [shape: bf16[1,5120], index: 4, kind: input, shape index: {}]   ;;  %s1382_s5 = inlined_call_operand.vmem [shape: bf16[4,5120], index: 5, kind: output, shape index: {0}]   ;;  %s1383_s6 = inlined_call_operand.vmem [shape: f32[4,640], index: 6, kind: output, shape index: {1}]  }
   0x1 LB: > { %s1032_s22 = sadd.s32 4294967295, %s986_s21   ;;  %p946_p0 = scmp.ge.s32.totalorder %s986_s21, 1  ;;  %s986_s21 = sphi %s1026_s21, %s17_s21  }
   0x2   : > { %p241_p1 = scmp.lt.s32.totalorder %s986_s21, 6 }
   0x4   : > { %p242_p2 = pnand %p946_p0, %p241_p1 }
   0x5   : > { %s1037_s23 = sshll.u32 (!%p242_p2), %s1032_s22, 3  ;;  %s988_s29 = smov (!%p242_p2), 126  }
   0x6   : > { %245 = sbr.rel (%p242_p2) target bundleno = 513 (0x201), region = 40  ;;  %p286_p3 = scmp.lt.s32.totalorder (!%p242_p2), %s1037_s23, 47 }
   0x7   : > { %s989_s30 = smov (!%p242_p2), 127   ;;  %s966_s7 = sadd.s32 (!%p242_p2), 8, %s1037_s23 }
   0x8   : > { %p293_p4 = scmp.lt.s32.totalorder (!%p242_p2), %s966_s7, 47  ;;  %p300_p5 = scmp.lt.s32.totalorder (!%p242_p2), %s1037_s23, 39 }
   0x9   : > { %p310_p6 = scmp.lt.s32.totalorder (!%p242_p2), %s1032_s22, 4 }
   0xb   : > { %s287_s24 = scalar_select %p286_p3, %s1037_s23, 47  ;;  %vm376_vm0 = vcmask 1039360   ;;  %vm403_vm1 = vcmask 1031168   ;;  %vm478_vm2 = vcmask 1043456   ;;  %vm590_vm3 = vcmask 588800  }
   0xc   : > { %s1385_s7 = smov (!%p293_p4, %s966_s7), 47  ;;  %s1387_s23 = smov (!%p300_p5, %s1037_s23), 39  ;;  %vm730_vm4 = vcmask 1041408   ;;  %vm734_vm5 = vcmask 1045508   ;;  %vm829_vm6 = vcmask 7168   ;;  %vm831_vm7 = vcmask 15360  }
   0xd   : > { %s948_s25 = sshll.u32 %s287_s24, 2  ;;  %s950_s8 = sshll.u32 %s1385_s7, 2 }
   0xe   : > { %s289_s28 = scalar_lea.vmem %s1379_s2, %s948_s25  ;;  %s296_s11 = scalar_lea.vmem %s1380_s3, %s950_s8 }
   0xf   : > { %v318_v0 = vld [vmem:[%s289_s28 + $0x18] sm:$0xff]  ;;  %v317_v1 = vld [vmem:[%s289_s28 + $0x10] sm:$0xff]  ;;  %v316_v2 = vld [vmem:[%s289_s28 + $0x8] sm:$0xff]  ;;  %s953_s16 = sshll.u32 %s1387_s23, 1  ;;  %s302_s25 = scalar_lea.vmem %s1381_s4, %s1387_s23 }
  0x10   : > { %v331_v3 = vunpack.c.l.b16 %v318_v0  ;;  %v329_v4 = vunpack.c.l.b16 %v317_v1  ;;  %v327_v5 = vunpack.c.l.b16 %v316_v2  ;;  %v330_v9 = vunpack.c.h.b16 %v317_v1  ;;  %v315_v18 = vld [vmem:[%s289_s28] sm:$0xff]  ;;  %v320_v32 = vld [vmem:[%s296_s11 + $0x8] sm:$0xf]  ;;  %s1337_s19 = scalar_lea.vmem %s1382_s5, %s953_s16  ;;  %s1389_s22 = smov (!%p310_p6, %s1032_s22), 4 }
  0x11   : > { %v328_v10 = vunpack.c.h.b16 %v316_v2  ;;  %v326_v19 = vunpack.c.h.b16 %v315_v18  ;;  %v325_v22 = vunpack.c.l.b16 %v315_v18  ;;  %v319_v24 = vld [vmem:[%s296_s11] sm:$0xff]  ;;  %v332_v29 = vunpack.c.h.b16 %v318_v0  ;;  %s954_s23 = sshll.u32 %s1389_s22, 2 }
  0x12   : > { %v1044_v6 = vpack.c.b16 %v331_v3, %v331_v3  ;;  %v1046_v7 = vpack.c.b16 %v329_v4, %v329_v4  ;;  %v1048_v8 = vpack.c.b16 %v327_v5, %v327_v5  ;;  %v1056_v11 = vpack.c.b16 %v330_v9, %v330_v9  ;;  %s313_s28 = scalar_lea.vmem %s1383_s6, %s954_s23 }
  0x13   : > { %v1061_v13 = vpack.c.b16 %v328_v10, %v328_v10  ;;  %v1093_v20 = vpack.c.b16 %v326_v19, %v326_v19  ;;  %v1114_v23 = vpack.c.b16 %v325_v22, %v325_v22  ;;  %v344_v25 = vunpack.c.h.b16 %v319_v24 }
  0x14   : > { %397 = vrot.lane.b32.xlu2 %v1044_v6, %s988_s29  ;;  %393 = vrot.lane.b32.xlu0 %v1046_v7, %s988_s29  ;;  %v1059_v12 = vrot.slane %v1046_v7, 4  ;;  %v1070_v14 = vrot.slane %v1056_v11, 4  ;;  %v1076_v16 = vrot.slane %v1048_v8, 4  ;;  %v1085_v17 = vrot.slane %v1044_v6, 4 }
  0x15   : > { %389 = vrot.lane.b32.xlu1 %v1048_v8, %s988_s29  ;;  %v1073_v15 = vrot.slane %v1061_v13, 4  ;;  %v1103_v21 = vrot.slane %v1093_v20, 4  ;;  %v343_v26 = vunpack.c.l.b16 %v319_v24  ;;  %v1122_v27 = vpack.c.b16 %v344_v25, %v344_v25 }
  0x16   : > { %v1132_v30 = vpack.c.b16 %v332_v29, %v332_v29  ;;  %v349_v31 = vrot.slane %v1114_v23, 4  ;;  %v345_v33 = vunpack.c.l.b16 %v320_v32 }
  0x17   : > { %v1124_v28 = vpack.c.b16 %v343_v26, %v343_v26  ;;  %v438_v34 = vrot.slane %v1122_v27, 4 }
  0x18   : > { %v348_v35 = vpack.c.b16 %v345_v33, %v345_v33  ;;  %v1149_v37 = vrot.slane %v1132_v30, 4 }
  0x19   : > { %v1142_v36 = vrot.slane %v1124_v28, 4 }
  0x1a   : > { %v465_v38 = vrot.slane %v348_v35, 4 }
  0x1c   : > { %395 = vrot.lane.b32.xlu0 %v1056_v11, %s988_s29  ;;  %366 = vrot.lane.b32.xlu2 %v1059_v12, %s989_s30 }
  0x1d   : > { %391 = vrot.lane.b32.xlu1 %v1061_v13, %s988_s29 }
  0x24   : > { %368 = vrot.lane.b32.xlu0 %v1070_v14, %s989_s30  ;;  %364 = vrot.lane.b32.xlu2 %v1073_v15, %s989_s30 }
  0x25   : > { %362 = vrot.lane.b32.xlu1 %v1076_v16, %s989_s30 }
  0x2c   : > { %370 = vrot.lane.b32.xlu0 %v1085_v17, %s989_s30  ;;  %418 = vrot.lane.b32.xlu2 %v1046_v7, %s989_s30 }
  0x2d   : > { %416 = vrot.lane.b32.xlu1 %v1061_v13, %s989_s30 }
  0x34   : > { %443 = vrot.lane.b32.xlu0 %v1073_v15, %s988_s29  ;;  %412 = vrot.lane.b32.xlu2 %v1093_v20, %s989_s30 }
  0x35   : > { %445 = vrot.lane.b32.xlu1 %v1059_v12, %s988_s29 }
  0x3c   : > { %414 = vrot.lane.b32.xlu0 %v1048_v8, %s989_s30  ;;  %439 = vrot.lane.b32.xlu2 %v1103_v21, %s988_s29 }
  0x3d   : > { %420 = vrot.lane.b32.xlu1 %v1056_v11, %s989_s30 }
  0x44   : > { %441 = vrot.lane.b32.xlu0 %v1076_v16, %s988_s29  ;;  %385 = vrot.lane.b32.xlu2 %v1114_v23, %s988_s29 }
  0x45   : > { %447 = vrot.lane.b32.xlu1 %v1070_v14, %s988_s29 }
  0x4c   : > { %387 = vrot.lane.b32.xlu0 %v1093_v20, %s988_s29  ;;  %472 = vrot.lane.b32.xlu2 %v1122_v27, %s988_s29 }
  0x4d   : > { %401 = vrot.lane.b32.xlu1 %v1124_v28, %s988_s29 }
  0x54   : > { %399 = vrot.lane.b32.xlu2 %v1132_v30, %s988_s29  ;;  %358 = vrot.lane.b32.xlu0 %v349_v31, %s989_s30 }
  0x55   : > { %360 = vrot.lane.b32.xlu1 %v1103_v21, %s989_s30 }
  0x5c   : > { %466 = vrot.lane.b32.xlu2 %v438_v34, %s989_s30  ;;  %474 = vrot.lane.b32.xlu0 %v348_v35, %s988_s29 }
  0x5d   : > { %374 = vrot.lane.b32.xlu1 %v1142_v36, %s989_s30 }
  0x64   : > { %424 = vrot.lane.b32.xlu2 %v1132_v30, %s989_s30  ;;  %372 = vrot.lane.b32.xlu0 %v1149_v37, %s989_s30 }
  0x65   : > { %468 = vrot.lane.b32.xlu1 %v465_v38, %s989_s30 }
  0x6c   : > { %453 = vrot.lane.b32.xlu2 %v1142_v36, %s988_s29  ;;  %426 = vrot.lane.b32.xlu0 %v1124_v28, %s989_s30 }
  0x6d   : > { %451 = vrot.lane.b32.xlu1 %v1149_v37, %s988_s29 }
  0x6e   : > { %v1162_v39 = vpop.permute.xlu2 %397 }
  0x74   : > { %449 = vrot.lane.b32.xlu2 %v1085_v17, %s988_s29  ;;  %422 = vrot.lane.b32.xlu0 %v1044_v6, %s989_s30 }
  0x75   : > { %428 = vrot.lane.b32.xlu1 %v1122_v27, %s989_s30 }
  0x76   : > { %v367_v40 = vpop.permute.xlu2 %366 }
  0x7c   : > { %455 = vrot.lane.b32.xlu0 %v438_v34, %s988_s29 }
  0x7e   : > { %v365_v41 = vpop.permute.xlu2 %364 }
  0x7f   : > { %v380_v46 = vsel %vm376_vm0, %v365_v41, %v367_v40 }
  0x80   : > { %v493_v56 = vsel %vm478_vm2, %v1061_v13, %v380_v46 }
  0x86   : > { %v394_v42 = vpop.permute.xlu0 %393  ;;  %v419_v44 = vpop.permute.xlu2 %418 }
  0x87   : > { %v1171_v43 = vpop.permute.xlu1 %389 }
  0x8e   : > { %v396_v45 = vpop.permute.xlu0 %395  ;;  %v413_v57 = vpop.permute.xlu2 %412 }
  0x8f   : > { %v392_v47 = vpop.permute.xlu1 %391  ;;  %v1175_v48 = vsel %vm403_vm1, %v394_v42, %v396_v45  ;;  %v1179_v49 = vsel %vm403_vm1, %v396_v45, %v1162_v39 }
  0x90   : > { %v406_v50 = vsel %vm403_vm1, %v1171_v43, %v392_v47  ;;  %v407_v51 = vsel %vm403_vm1, %v392_v47, %v394_v42  ;;  %v598_v52 = vsel %vm478_vm2, %v1175_v48, 0  ;;  %v600_v53 = vsel %vm478_vm2, %v1179_v49, 0 }
  0x91   : > { %v594_v54 = vsel %vm478_vm2, %v406_v50, 0  ;;  %v596_v55 = vsel %vm478_vm2, %v407_v51, 0  ;;  %641 = vmatpush.bf16.msra.mxu2 %v598_v52  ;;  %654 = vmatpush.bf16.msra.mxu3 %v600_v53  ;;  %v521_v18 = vsel %vm478_vm2, %v406_v50, %v1073_v15 }
  0x92   : > { %615 = vmatpush.bf16.msra.mxu0 %v594_v54  ;;  %628 = vmatpush.bf16.msra.mxu1 %v596_v55 }
  0x96   : > { %v369_v58 = vpop.permute.xlu0 %368  ;;  %629 = vmatpush.bf16.msra.mxu1 %v493_v56  ;;  %v440_v0 = vpop.permute.xlu2 %439 }
  0x97   : > { %v381_v59 = vsel %vm376_vm0, %v367_v40, %v369_v58  ;;  %v1193_v60 = vpop.permute.xlu1 %362 }
  0x98   : > { %v379_v61 = vsel %vm376_vm0, %v1193_v60, %v365_v41  ;;  %v1199_v62 = vsel %vm478_vm2, %v1046_v7, %v381_v59  ;;  %v525_v41 = vsel %vm478_vm2, %v407_v51, %v1059_v12  ;;  %v1246_v12 = vld [vmem:[%s1377_s0] sm:$0x3] }
  0x99   : > { %642 = vmatpush.bf16.msra.mxu2 %v1199_v62  ;;  %v489_v63 = vsel %vm478_vm2, %v1048_v8, %v379_v61 }
  0x9a   : > { %616 = vmatpush.bf16.msra.mxu0 %v489_v63 }
  0x9e   : > { %v1204_v1 = vpop.permute.xlu0 %370  ;;  %v386_v10 = vpop.permute.xlu2 %385 }
  0x9f   : > { %v382_v2 = vsel %vm376_vm0, %v369_v58, %v1204_v1  ;;  %v417_v3 = vpop.permute.xlu1 %416 }
  0xa0   : > { %v1210_v4 = vsel %vm478_vm2, %v1056_v11, %v382_v2  ;;  %v432_v5 = vsel %vm376_vm0, %v417_v3, %v419_v44 }
  0xa1   : > { %655 = vmatpush.bf16.msra.mxu3 %v1210_v4 }
  0xa6   : > { %v444_v7 = vpop.permute.xlu0 %443  ;;  %v473_v11 = vpop.permute.xlu2 %472 }
  0xa7   : > { %v446_v9 = vpop.permute.xlu1 %445 }
  0xa8   : > { %v459_v8 = vsel %vm403_vm1, %v444_v7, %v446_v9 }
  0xa9   : > { %v553_v13 = vsel %vm478_vm2, %v432_v5, %v459_v8  ;;  %v584_v5 = vld [vmem:[%s1378_s1] sm:$0xf] }
  0xaa   : > { %643 = vmatpush.bf16.msra.mxu2 %v553_v13 }
  0xae   : > { %644 = vmatpush.bf16.msra.mxu2 %v521_v18  ;;  %v415_v19 = vpop.permute.xlu0 %414  ;;  %v400_v40 = vpop.permute.xlu2 %399 }
  0xaf   : > { %v1218_v22 = vpop.permute.xlu1 %420  ;;  %v430_v25 = vsel %vm376_vm0, %v413_v57, %v415_v19  ;;  %v431_v26 = vsel %vm376_vm0, %v415_v19, %v417_v3  ;;  %v410_v54 = vsel %vm403_vm1, %v1162_v39, %v400_v40  ;;  %v990_v3 = vmov 0  }
  0xb0   : > { %v433_v15 = vsel %vm376_vm0, %v419_v44, %v1218_v22  ;;  %v602_v61 = vsel %vm478_vm2, %v410_v54, 0  ;;  %978 = vset.pattern.permute.xlu1 %v990_v3  ;;  %979 = vset.pattern.permute.xlu0 %v990_v3 }
  0xb1   : > { %587 = vperm.xlu1 %978, %v584_v5  }
  0xb2   : > { %645 = vmatpush.bf16.msra.mxu2 %v489_v63 }
  0xb5   : > { %957 = vmatmul.msk.bf16.vlgmr.msra.gmra.mxu2 %vm590_vm3, %v1246_v12 }
  0xb6   : > { %v442_v24 = vpop.permute.xlu0 %441 }
  0xb7   : > { %v457_v29 = vsel %vm403_vm1, %v440_v0, %v442_v24  ;;  %v458_v31 = vsel %vm403_vm1, %v442_v24, %v444_v7  ;;  %v1224_v32 = vpop.permute.xlu1 %447 }
  0xb8   : > { %v460_v33 = vsel %vm403_vm1, %v446_v9, %v1224_v32  ;;  %v545_v34 = vsel %vm478_vm2, %v430_v25, %v457_v29  ;;  %v549_v35 = vsel %vm478_vm2, %v431_v26, %v458_v31 }
  0xb9   : > { %617 = vmatpush.bf16.msra.mxu0 %v545_v34  ;;  %630 = vmatpush.bf16.msra.mxu1 %v549_v35  ;;  %v557_v38 = vsel %vm478_vm2, %v433_v15, %v460_v33 }
  0xba   : > { %656 = vmatpush.bf16.msra.mxu3 %v557_v38 }
  0xbe   : > { %657 = vmatpush.bf16.msra.mxu3 %v525_v41  ;;  %v388_v42 = vpop.permute.xlu0 %387 }
  0xbf   : > { %v402_v45 = vpop.permute.xlu1 %401  ;;  %v404_v44 = vsel %vm403_vm1, %v386_v10, %v388_v42  ;;  %v405_v46 = vsel %vm403_vm1, %v388_v42, %v1171_v43 }
  0xc0   : > { %v513_v47 = vsel %vm478_vm2, %v404_v44, %v1103_v21  ;;  %v517_v50 = vsel %vm478_vm2, %v405_v46, %v1076_v16  ;;  %v476_v52 = vsel %vm403_vm1, %v402_v45, %v473_v11  ;;  %v1252_v21 = vsel %vm403_vm1, %v400_v40, %v402_v45  ;;  %v467_v16 = vpop.permute.xlu2 %466 }
  0xc1   : > { %618 = vmatpush.bf16.msra.mxu0 %v513_v47  ;;  %631 = vmatpush.bf16.msra.mxu1 %v517_v50  ;;  %v607_v51 = vsel %vm478_vm2, %v476_v52, 0  ;;  %v604_v57 = vsel %vm478_vm2, %v1252_v21, 0 }
  0xc2   : > { %658 = vmatpush.bf16.msra.mxu3 %v493_v56  ;;  %693 = vmatpush.bf16.msrb.mxu2 %v607_v51 }
  0xc5   : > { %958 = vmatmul.msk.bf16.vlgmr.msra.gmra.mxu3 %vm590_vm3, %v1246_v12 }
  0xc6   : > { %v359_v43 = vpop.permute.xlu0 %358 }
  0xc7   : > { %v361_v53 = vpop.permute.xlu1 %360 }
  0xc8   : > { %v378_v55 = vsel %vm376_vm0, %v361_v53, %v1193_v60  ;;  %v377_v56 = vsel %vm376_vm0, %v359_v43, %v361_v53 }
  0xc9   : > { %v481_v58 = vsel %vm478_vm2, %v1114_v23, %v377_v56  ;;  %v485_v59 = vsel %vm478_vm2, %v1093_v20, %v378_v55  ;;  %v425_v23 = vpop.permute.xlu2 %424 }
  0xca   : > { %619 = vmatpush.bf16.msra.mxu0 %v481_v58  ;;  %632 = vmatpush.bf16.msra.mxu1 %v485_v59  ;;  %v750_v58 = vld [vmem:[%s302_s25] sm:$0xff] }
  0xcb   : > { %v751_v59 = vunpack.c.l.bf16 %v750_v58 }
  0xcd   : > { %955 = vmatmul.msk.bf16.vlgmr.msra.gmra.mxu0 %vm590_vm3, %v1246_v12  ;;  %956 = vmatmul.msk.bf16.vlgmr.msra.gmra.mxu1 %vm590_vm3, %v1246_v12 }
  0xce   : > { %667 = vmatpush.bf16.msrb.mxu0 %v602_v61  ;;  %680 = vmatpush.bf16.msrb.mxu1 %v604_v57  ;;  %v475_v39 = vpop.permute.xlu0 %474  ;;  %v755_v61 = vperm.slane %v751_v59, 0 }
  0xcf   : > { %v375_v60 = vpop.permute.xlu1 %374  ;;  %v477_v63 = vsel %vm403_vm1, %v473_v11, %v475_v39  ;;  %v756_v39 = vperm.slane %v751_v59, 2 }
  0xd0   : > { %v470_v0 = vsel %vm376_vm0, %v375_v60, %v467_v16  ;;  %v610_v20 = vsel %vm478_vm2, %v477_v63, 0  ;;  %v771_v63 = vperm.slane %v755_v61, 0 }
  0xd1   : > { %706 = vmatpush.bf16.msrb.mxu3 %v610_v20  ;;  %v577_v2 = vsel %vm478_vm2, %v1124_v28, %v470_v0  ;;  %v454_v11 = vpop.permute.xlu2 %453  ;;  %v752_v0 = vunpack.c.h.bf16 %v750_v58  ;;  %v758_v20 = vperm.slane %v751_v59, 6 }
  0xd2   : > { %694 = vmatpush.bf16.msrb.mxu2 %v577_v2 }
  0xd6   : > { %v373_v7 = vpop.permute.xlu0 %372 }
  0xd7   : > { %v469_v9 = vpop.permute.xlu1 %468  ;;  %v383_v10 = vsel %vm376_vm0, %v1204_v1, %v373_v7  ;;  %v384_v8 = vsel %vm376_vm0, %v373_v7, %v375_v60  ;;  %v757_v60 = vperm.slane %v751_v59, 4  ;;  %v759_v7 = vperm.slane %v752_v0, 0 }
  0xd8   : > { %v471_v13 = vsel %vm376_vm0, %v467_v16, %v469_v9  ;;  %v505_v28 = vsel %vm478_vm2, %v1044_v6, %v383_v10  ;;  %v509_v18 = vsel %vm478_vm2, %v1132_v30, %v384_v8  ;;  %v537_v30 = vsel %vm478_vm2, %v410_v54, %v1149_v37 }
  0xd9   : > { %668 = vmatpush.bf16.msrb.mxu0 %v505_v28  ;;  %681 = vmatpush.bf16.msrb.mxu1 %v509_v18  ;;  %v581_v19 = vsel %vm478_vm2, %v1122_v27, %v471_v13  ;;  %v450_v6 = vpop.permute.xlu2 %449  ;;  %v529_v37 = vsel %vm478_vm2, %v1175_v48, %v1070_v14  ;;  %v541_v14 = vsel %vm478_vm2, %v1252_v21, %v1142_v36  ;;  %v773_v2 = vperm.slane %v757_v60, 0 }
  0xda   : > { %707 = vmatpush.bf16.msrb.mxu3 %v581_v19  ;;  %v461_v27 = vsel %vm403_vm1, %v1224_v32, %v450_v6  ;;  %v533_v32 = vsel %vm478_vm2, %v1179_v49, %v1085_v17  ;;  %v774_v9 = vperm.slane %v758_v20, 0  ;;  %v760_v19 = vperm.slane %v752_v0, 2 }
  0xde   : > { %v427_v24 = vpop.permute.xlu0 %426 }
  0xdf   : > { %v452_v25 = vpop.permute.xlu1 %451  ;;  %v436_v1 = vsel %vm376_vm0, %v425_v23, %v427_v24 }
  0xe0   : > { %v463_v26 = vsel %vm403_vm1, %v452_v25, %v454_v11  ;;  %v462_v31 = vsel %vm403_vm1, %v450_v6, %v452_v25 }
  0xe1   : > { %v569_v29 = vsel %vm478_vm2, %v436_v1, %v463_v26 }
  0xe2   : > { %695 = vmatpush.bf16.msrb.mxu2 %v569_v29 }
  0xe6   : > { %696 = vmatpush.bf16.msrb.mxu2 %v537_v30  ;;  %v423_v15 = vpop.permute.xlu0 %422 }
  0xe7   : > { %v434_v33 = vsel %vm376_vm0, %v1218_v22, %v423_v15  ;;  %v435_v34 = vsel %vm376_vm0, %v423_v15, %v425_v23  ;;  %v429_v40 = vpop.permute.xlu1 %428  ;;  %v772_v23 = vperm.slane %v756_v39, 0 }
  0xe8   : > { %v561_v35 = vsel %vm478_vm2, %v434_v33, %v461_v27  ;;  %v565_v38 = vsel %vm478_vm2, %v435_v34, %v462_v31  ;;  %v437_v41 = vsel %vm376_vm0, %v427_v24, %v429_v40  ;;  %v776_v33 = vperm.slane %v760_v19, 0 }
  0xe9   : > { %669 = vmatpush.bf16.msrb.mxu0 %v561_v35  ;;  %682 = vmatpush.bf16.msrb.mxu1 %v565_v38  ;;  %v761_v35 = vperm.slane %v752_v0, 4 }
  0xea   : > { %697 = vmatpush.bf16.msrb.mxu2 %v505_v28 }
  0xed   : > { %670 = vmatpush.bf16.msrb.mxu0 %v529_v37  ;;  %683 = vmatpush.bf16.msrb.mxu1 %v533_v32 }
  0xee   : > { %v456_v22 = vpop.permute.xlu0 %455  ;;  %961 = vmatmul.msk.bf16.vlgmr.msrb.gmra.mxu2 %vm590_vm3, %v1246_v12 }
  0xef   : > { %v464_v42 = vsel %vm403_vm1, %v454_v11, %v456_v22  ;;  %v775_v11 = vperm.slane %v759_v7, 0 }
  0xf0   : > { %v573_v45 = vsel %vm478_vm2, %v437_v41, %v464_v42 }
  0xf1   : > { %671 = vmatpush.bf16.msrb.mxu0 %v1199_v62  ;;  %684 = vmatpush.bf16.msrb.mxu1 %v1210_v4 }
  0xf2   : > { %708 = vmatpush.bf16.msrb.mxu3 %v573_v45 }
  0xf4   : > { %959 = vmatmul.msk.bf16.vlgmr.msrb.gmra.mxu0 %vm590_vm3, %v1246_v12  ;;  %960 = vmatmul.msk.bf16.vlgmr.msrb.gmra.mxu1 %vm590_vm3, %v1246_v12 }
  0xf6   : > { %709 = vmatpush.bf16.msrb.mxu3 %v541_v14 }
  0xfa   : > { %710 = vmatpush.bf16.msrb.mxu3 %v509_v18 }
  0xfd   : > { %962 = vmatmul.msk.bf16.vlgmr.msrb.gmra.mxu3 %vm590_vm3, %v1246_v12 }
 0x123   : > { %v1325_v48 = vpop.permute.xlu1 %587 }
 0x138   : > { %v647_v17 = vpop.f32.mrf.mxu2 }
 0x139   : > { %v648_v62 = vadd.f32 %v647_v17, %v1325_v48  ;;  %v777_v17 = vperm.slane %v761_v35, 0 }
 0x13b   : > { %v781_v10 = vmul.f32 %v773_v2, %v648_v62 }
 0x13d   : > { %v806_v26 = vmul.f32 %v781_v10, %v781_v10  ;;  %v790_v27 = vsel %vm478_vm2, %v781_v10, 0.0 }
 0x13f   : > { %v815_v32 = vsel %vm478_vm2, %v806_v26, 0.0 }
 0x140   : > { %v649_v51 = vpop.f32.mrf.mxu2 }
 0x141   : > { %v762_v51 = vperm.slane %v752_v0, 6 }
 0x148   : > { %v660_v49 = vpop.f32.mrf.mxu3 }
 0x149   : > { %v661_v4 = vadd.f32 %v660_v49, %v1325_v48 }
 0x14a   : > { %v621_v44 = vpop.f32.mrf.mxu0  ;;  %v634_v46 = vpop.f32.mrf.mxu1 }
 0x14b   : > { %v622_v47 = vadd.f32 %v621_v44, %v1325_v48  ;;  %v635_v36 = vadd.f32 %v634_v46, %v1325_v48  ;;  %v717_v50 = vpack.c.bf16 %v661_v4, %v648_v62  ;;  %v782_v25 = vmul.f32 %v774_v9, %v661_v4 }
 0x14d   : > { %v716_v52 = vpack.c.bf16 %v635_v36, %v622_v47  ;;  %v725_v12 = vrot.slane %v717_v50, 4  ;;  %v726_v21 = vrot.slane %v717_v50, 6  ;;  %v779_v3 = vmul.f32 %v771_v63, %v622_v47 }
 0x14e   : > { %v780_v5 = vmul.f32 %v772_v23, %v635_v36  ;;  %v807_v37 = vmul.f32 %v782_v25, %v782_v25  ;;  %v792_v41 = vsel %vm478_vm2, %v782_v25, 0.0 }
 0x14f   : > { %v724_v16 = vrot.slane %v716_v52, 2  ;;  %v737_v54 = vsel %vm734_vm5, %v725_v12, %v726_v21  ;;  %v804_v8 = vmul.f32 %v779_v3, %v779_v3  ;;  %v787_v28 = vsel %vm478_vm2, %v779_v3, 0.0 }
 0x150   : > { %v662_v43 = vpop.f32.mrf.mxu3  ;;  %v805_v13 = vmul.f32 %v780_v5, %v780_v5  ;;  %v788_v18 = vsel %vm478_vm2, %v780_v5, 0.0  ;;  %v817_v46 = vsel %vm478_vm2, %v807_v37, 0.0 }
 0x151   : > { %v733_v53 = vsel %vm730_vm4, %v716_v52, %v724_v16  ;;  %v812_v29 = vsel %vm478_vm2, %v804_v8, 0.0  ;;  %v789_v30 = vadd.f32 %v788_v18, %v787_v28 }
 0x152   : > { %v623_v55 = vpop.f32.mrf.mxu0  ;;  %v636_v56 = vpop.f32.mrf.mxu1  ;;  %v738_v57 = vsel %vm478_vm2, %v733_v53, %v737_v54  ;;  %v813_v6 = vsel %vm478_vm2, %v805_v13, 0.0 }
 0x153   : > { %748 = vst [vmem:[%s1337_s19] sm:$0xff] %v738_v57  ;;  %v814_v38 = vadd.f32 %v813_v6, %v812_v29  ;;  %v791_v22 = vadd.f32 %v790_v27, %v789_v30  ;;  %v778_v55 = vperm.slane %v762_v51, 0 }
 0x155   : > { %v816_v49 = vadd.f32 %v815_v32, %v814_v38  ;;  %v793_v47 = vadd.f32 %v792_v41, %v791_v22 }
 0x157   : > { %v818_v16 = vadd.f32 %v817_v46, %v816_v49 }
 0x171   : > { %v673_v24 = vpop.f32.mrf.mxu0  ;;  %v686_v1 = vpop.f32.mrf.mxu1 }
 0x172   : > { %v674_v31 = vadd.f32 %v673_v24, %v1325_v48  ;;  %v699_v15 = vpop.f32.mrf.mxu2  ;;  %v687_v40 = vadd.f32 %v686_v1, %v1325_v48 }
 0x173   : > { %v700_v14 = vadd.f32 %v699_v15, %v1325_v48 }
 0x174   : > { %v783_v34 = vmul.f32 %v775_v11, %v674_v31  ;;  %v784_v45 = vmul.f32 %v776_v33, %v687_v40  ;;  %v718_v54 = vpack.c.bf16 %v687_v40, %v674_v31 }
 0x175   : > { %v785_v21 = vmul.f32 %v777_v17, %v700_v14 }
 0x176   : > { %v808_v42 = vmul.f32 %v783_v34, %v783_v34  ;;  %v794_v62 = vsel %vm478_vm2, %v783_v34, 0.0  ;;  %v809_v52 = vmul.f32 %v784_v45, %v784_v45  ;;  %v796_v43 = vsel %vm478_vm2, %v784_v45, 0.0 }
 0x177   : > { %v795_v12 = vadd.f32 %v794_v62, %v793_v47  ;;  %v810_v57 = vmul.f32 %v785_v21, %v785_v21  ;;  %v727_v60 = vrot.slane %v718_v54, 2  ;;  %v798_v0 = vsel %vm478_vm2, %v785_v21, 0.0 }
 0x178   : > { %v819_v50 = vsel %vm478_vm2, %v808_v42, 0.0  ;;  %v821_v56 = vsel %vm478_vm2, %v809_v52, 0.0 }
 0x179   : > { %v675_v4 = vpop.f32.mrf.mxu0  ;;  %v688_v44 = vpop.f32.mrf.mxu1  ;;  %v820_v53 = vadd.f32 %v819_v50, %v818_v16  ;;  %v797_v59 = vadd.f32 %v796_v43, %v795_v12  ;;  %v823_v2 = vsel %vm478_vm2, %v810_v57, 0.0 }
 0x17a   : > { %v701_v36 = vpop.f32.mrf.mxu2 }
 0x17b   : > { %v822_v39 = vadd.f32 %v821_v56, %v820_v53  ;;  %v799_v20 = vadd.f32 %v798_v0, %v797_v59 }
 0x17d   : > { %v824_v8 = vadd.f32 %v823_v2, %v822_v39 }
 0x180   : > { %v712_v58 = vpop.f32.mrf.mxu3 }
 0x181   : > { %v713_v61 = vadd.f32 %v712_v58, %v1325_v48  ;;  %v741_v48 = vsel %vm730_vm4, %v718_v54, %v727_v60 }
 0x183   : > { %v719_v63 = vpack.c.bf16 %v713_v61, %v700_v14  ;;  %v786_v23 = vmul.f32 %v778_v55, %v713_v61 }
 0x185   : > { %v728_v3 = vrot.slane %v719_v63, 4  ;;  %v729_v5 = vrot.slane %v719_v63, 6  ;;  %v800_v7 = vsel %vm478_vm2, %v786_v23, 0.0  ;;  %v811_v9 = vmul.f32 %v786_v23, %v786_v23 }
 0x186   : > { %v801_v10 = vadd.f32 %v800_v7, %v799_v20 }
 0x187   : > { %v744_v13 = vsel %vm734_vm5, %v728_v3, %v729_v5  ;;  %v825_v28 = vsel %vm478_vm2, %v811_v9, 0.0 }
 0x188   : > { %v745_v18 = vsel %vm478_vm2, %v741_v48, %v744_v13  ;;  %v714_v19 = vpop.f32.mrf.mxu3  ;;  %802 = vadd.xlane.f32.xlu2 %v801_v10  ;;  %v826_v11 = vadd.f32 %v825_v28, %v824_v8 }
 0x189   : > { %749 = vst [vmem:[%s1337_s19 + $0x8] sm:$0xff] %v745_v18 }
 0x18a   : > { %827 = vadd.xlane.f32.xlu0 %v826_v11 }
 0x1fb   : > { %v803_v24 = vpop.xlane.xlu2 %802 }
 0x1fd   : > { %v828_v25 = vpop.xlane.xlu0 %827 }
 0x1fe   : > { %v830_v1 = vsel %vm829_vm6, %v803_v24, %v828_v25 }
 0x1ff   : > { %v832_v26 = vsel %vm831_vm7, %v830_v1, 0.0 }
 0x200   : > { %833 = vst [vmem:[%s313_s28] sm:$0xf] %v832_v26 }
 0x201 PF: > { %s17_s21 = sadd.s32 1, %s986_s21  }
 0x202   : > { %p14_p7 = scmp.ge.s32.totalorder %s17_s21, 7  }
 0x204   :  { %16 = sbr.rel (!%p14_p7) target bundleno = 1 (0x1), region = 88 }

// kernel: up_forward.7
= control target key start
LH: loop header
LB: loop body
LE: loop exit
PB: predicated region body
PF: predicated region fallthrough
CT: control target
= control target key end

     0   :  { %s324_s12 = smov 0   ;;  %s347_s0 = inlined_call_operand.vmem [shape: bf16[4,4096], index: 0, kind: input, shape index: {}]   ;;  %s348_s1 = inlined_call_operand.vmem [shape: f32[4,1], index: 1, kind: input, shape index: {}]   ;;  %s349_s2 = inlined_call_operand.vmem [shape: f32[4,1], index: 2, kind: input, shape index: {}]   ;;  %s350_s3 = inlined_call_operand.vmem [shape: f32[4,4096], index: 3, kind: output, shape index: {}]  }
   0x1 LB: > { %s272_s13 = sadd.s32 4294967295, %s300_s12   ;;  %p276_p0 = scmp.ge.s32.totalorder %s300_s12, 1  ;;  %s300_s12 = sphi %s324_s12, %s13_s12  }
   0x2   : > { %p138_p1 = scmp.lt.s32.totalorder %s300_s12, 5 }
   0x4   : > { %p139_p2 = pnand %p276_p0, %p138_p1 }
   0x5   : > { %s277_s18 = sshll.u32 (!%p139_p2), %s272_s13, 3 }
   0x6   : > { %142 = sbr.rel (%p139_p2) target bundleno = 146 (0x92), region = 32  ;;  %p163_p3 = scmp.lt.s32.totalorder (!%p139_p2), %s277_s18, 31 }
   0xb   : > { %v180_v0 = vld [vmem:[%s348_s1] sm:$0xf]  ;;  %v302_v1 = vmov 0   ;;  %s352_s18 = smov (!%p163_p3, %s277_s18), 31  ;;  %v303_v3 = vmov 839922192  }
   0xc   : > { %293 = vset.pattern.permute.xlu0 %v302_v1  ;;  %v194_v2 = vld [vmem:[%s349_s2] sm:$0xf]  ;;  %s278_s19 = sshll.u32 %s352_s18, 1  ;;  %v186_v4 = vunpack.c.l.s4 %v303_v3  ;;  %s280_s23 = sshll.u32 %s352_s18, 2 }
   0xd   : > { %183 = vperm.xlu0 %293, %v180_v0   ;;  %s166_s22 = scalar_lea.vmem %s347_s0, %s278_s19  ;;  %s172_s26 = scalar_lea.vmem %s350_s3, %s280_s23 }
   0xe   : > { %v187_v5 = vunpack.c.0.s8 %v186_v4  ;;  %v174_v7 = vld [vmem:[%s166_s22] sm:$0xff]  ;;  %v175_v8 = vld [vmem:[%s166_s22 + $0x8] sm:$0xff] }
   0xf   : > { %v176_v9 = vunpack.c.l.bf16 %v174_v7  ;;  %v177_v11 = vunpack.c.h.bf16 %v174_v7  ;;  %v178_v12 = vunpack.c.l.bf16 %v175_v8  ;;  %v179_v13 = vunpack.c.h.bf16 %v175_v8 }
  0x15   : > { %197 = vperm.xlu0 %293, %v194_v2  }
  0x7f   : > { %v184_v6 = vpop.permute.xlu0 %183 }
  0x80   : > { %v188_v10 = vperm.slane %v184_v6, %v187_v5 }
  0x82   : > { %v190_v14 = vmul.f32 %v188_v10, %v176_v9  ;;  %v191_v16 = vmul.f32 %v188_v10, %v177_v11  ;;  %v192_v17 = vmul.f32 %v188_v10, %v178_v12  ;;  %v193_v18 = vmul.f32 %v188_v10, %v179_v13 }
  0x87   : > { %v198_v15 = vpop.permute.xlu0 %197 }
  0x88   : > { %v202_v19 = vperm.slane %v198_v15, %v187_v5 }
  0x8a   : > { %v204_v20 = vadd.f32 %v202_v19, %v190_v14  ;;  %v205_v21 = vadd.f32 %v202_v19, %v191_v16  ;;  %v206_v22 = vadd.f32 %v202_v19, %v192_v17  ;;  %v207_v23 = vadd.f32 %v202_v19, %v193_v18 }
  0x8c   : > { %v208_v24 = vmax.f32 %v204_v20, 0.0  ;;  %v209_v25 = vmax.f32 %v205_v21, 0.0  ;;  %v210_v26 = vmax.f32 %v206_v22, 0.0  ;;  %v211_v27 = vmax.f32 %v207_v23, 0.0 }
  0x8e   : > { %212 = vst [vmem:[%s172_s26] sm:$0xff] %v208_v24 }
  0x8f   : > { %213 = vst [vmem:[%s172_s26 + $0x8] sm:$0xff] %v209_v25 }
  0x90   : > { %214 = vst [vmem:[%s172_s26 + $0x10] sm:$0xff] %v210_v26 }
  0x91   : > { %215 = vst [vmem:[%s172_s26 + $0x18] sm:$0xff] %v211_v27 }
  0x92 PF: > { %s13_s12 = sadd.s32 1, %s300_s12  }
  0x93   : > { %p10_p4 = scmp.ge.s32.totalorder %s13_s12, 6  }
  0x95   :  { %12 = sbr.rel (!%p10_p4) target bundleno = 1 (0x1), region = 62 }

// kernel: up_forward.6
= control target key start
LH: loop header
LB: loop body
LE: loop exit
PB: predicated region body
PF: predicated region fallthrough
CT: control target
= control target key end

     0   :  { %s1109_s21 = smov 0   ;;  %s1531_s0 = inlined_call_operand.vmem [shape: bf16[4,36], index: 0, kind: input, shape index: {}]   ;;  %s1532_s1 = inlined_call_operand.vmem [shape: f32[4,1], index: 1, kind: input, shape index: {}]   ;;  %s1533_s2 = inlined_call_operand.vmem [shape: bf16[4,5120], index: 2, kind: input, shape index: {}, may-alias: {2,3}]   ;;  %s1534_s3 = inlined_call_operand.vmem [shape: bf16[4,5120], index: 3, kind: input, shape index: {}, may-alias: {2,3}]   ;;  %s1535_s4 = inlined_call_operand.vmem [shape: bf16[1,4096], index: 4, kind: input, shape index: {}]   ;;  %s1536_s5 = inlined_call_operand.vmem [shape: bf16[4,4096], index: 5, kind: output, shape index: {0}]   ;;  %s1537_s6 = inlined_call_operand.vmem [shape: f32[4,512], index: 6, kind: output, shape index: {1}]  }
   0x1 LB: > { %s1115_s22 = sadd.s32 4294967295, %s1069_s21   ;;  %p1030_p0 = scmp.ge.s32.totalorder %s1069_s21, 1  ;;  %s1069_s21 = sphi %s1109_s21, %s17_s21  }
   0x2   : > { %p241_p1 = scmp.lt.s32.totalorder %s1069_s21, 5 }
   0x4   : > { %p242_p2 = pnand %p1030_p0, %p241_p1 }
   0x5   : > { %s1120_s23 = sshll.u32 (!%p242_p2), %s1115_s22, 3  ;;  %s1071_s29 = smov (!%p242_p2), 126  }
   0x6   : > { %245 = sbr.rel (%p242_p2) target bundleno = 543 (0x21f), region = 40  ;;  %p286_p3 = scmp.lt.s32.totalorder (!%p242_p2), %s1120_s23, 39 }
   0x7   : > { %s1072_s30 = smov (!%p242_p2), 127   ;;  %s1050_s7 = sadd.s32 (!%p242_p2), 8, %s1120_s23 }
   0x8   : > { %p293_p4 = scmp.lt.s32.totalorder (!%p242_p2), %s1050_s7, 39  ;;  %p300_p5 = scmp.lt.s32.totalorder (!%p242_p2), %s1120_s23, 31 }
   0x9   : > { %p310_p6 = scmp.lt.s32.totalorder (!%p242_p2), %s1115_s22, 3 }
   0xb   : > { %s287_s24 = scalar_select %p286_p3, %s1120_s23, 39  ;;  %vm414_vm0 = vcmask 1031168   ;;  %vm539_vm1 = vcmask 1041408   ;;  %vm378_vm2 = vcmask 1039360   ;;  %vm556_vm3 = vcmask 1043456  }
   0xc   : > { %s1539_s7 = smov (!%p293_p4, %s1050_s7), 39  ;;  %vm573_vm4 = vcmask 1045504   ;;  %vm669_vm5 = vcmask 293888   ;;  %s1541_s23 = smov (!%p300_p5, %s1120_s23), 31  ;;  %vm818_vm6 = vcmask 1045508   ;;  %vm913_vm7 = vcmask 7168  }
   0xd   : > { %s1032_s25 = sshll.u32 %s287_s24, 1  ;;  %s1034_s8 = sshll.u32 %s1539_s7, 1  ;;  %vm915_vm8 = vcmask 15360  }
   0xe   : > { %s289_s28 = scalar_lea.vmem %s1533_s2, %s1032_s25  ;;  %s296_s11 = scalar_lea.vmem %s1534_s3, %s1034_s8 }
   0xf   : > { %v316_v0 = vld [vmem:[%s289_s28 + $0x8] sm:$0xff]  ;;  %v315_v1 = vld [vmem:[%s289_s28] sm:$0xff]  ;;  %s1037_s16 = sshll.u32 %s1541_s23, 1  ;;  %s302_s25 = scalar_lea.vmem %s1535_s4, %s1541_s23 }
  0x10   : > { %323 = vst [vmem:[#allocation1 + $0x20] ss:$4 sm:$0xff] %v316_v0  ;;  %v317_v13 = vld [vmem:[%s296_s11] sm:$0xff]  ;;  %v318_v17 = vld [vmem:[%s296_s11 + $0x8] sm:$0xff]  ;;  %s1490_s19 = scalar_lea.vmem %s1536_s5, %s1037_s16  ;;  %s1543_s22 = smov (!%p310_p6, %s1115_s22), 3 }
  0x11   : > { %320 = vst [vmem:[#allocation1] ss:$4 sm:$0xff] %v315_v1  ;;  %s1038_s23 = sshll.u32 %s1543_s22, 2 }
  0x12   : > { %s313_s28 = scalar_lea.vmem %s1537_s6, %s1038_s23 }
  0x17   : > { %v1127_v2 = vld.sshfl [vmem:[#allocation1 + $0x30] sm:$0xff pattern:$0x73625140]  ;;  %v1129_v3 = vld.sshfl [vmem:[#allocation1 + $0x20] sm:$0xff pattern:$0x73625140] }
  0x18   : > { %521 = vrot.lane.b32.xlu2 %v1127_v2, %s1071_s29  ;;  %517 = vrot.lane.b32.xlu0 %v1129_v3, %s1071_s29  ;;  %v1135_v4 = vld.sshfl [vmem:[#allocation1 + $0x18] sm:$0xff pattern:$0x73625140]  ;;  %v1140_v6 = vld.sshfl [vmem:[#allocation1 + $0x28] sm:$0xff pattern:$0x73625140] }
  0x19   : > { %435 = vrot.lane.b32.xlu1 %v1135_v4, %s1072_s30  ;;  %v354_v5 = vrot.slane %v1135_v4, 6  ;;  %v355_v7 = vrot.slane %v1129_v3, 6  ;;  %v1148_v8 = vld.sshfl [vmem:[#allocation1 + $0x10] sm:$0xff pattern:$0x73625140]  ;;  %v356_v10 = vrot.slane %v1140_v6, 6 }
  0x1a   : > { %v1156_v9 = vld.sshfl [vmem:[#allocation1 + $0x8] sm:$0xff pattern:$0x73625140]  ;;  %v353_v12 = vrot.slane %v1148_v8, 6  ;;  %v426_v15 = vrot.slane %v1129_v3, 2  ;;  %v427_v16 = vrot.slane %v1140_v6, 2 }
  0x1b   : > { %v352_v11 = vrot.slane %v1156_v9, 6  ;;  %v1175_v14 = vld.sshfl [vmem:[#allocation1] sm:$0xff pattern:$0x73625140]  ;;  %v425_v19 = vrot.slane %v1135_v4, 2  ;;  %v424_v20 = vrot.slane %v1148_v8, 2 }
  0x1c   : > { %341 = vst [vmem:[#allocation1] ss:$4 sm:$0xff] %v317_v13  ;;  %v1186_v18 = vld.sshfl [vmem:[#allocation1 + $0x38] sm:$0xff pattern:$0x73625140]  ;;  %v390_v21 = vrot.slane %v1135_v4, 4 }
  0x1d   : > { %344 = vst [vmem:[#allocation1 + $0x20] ss:$4 sm:$0xff] %v318_v17  ;;  %v428_v22 = vrot.slane %v1127_v2, 2  ;;  %v389_v23 = vrot.slane %v1148_v8, 4  ;;  %v351_v24 = vrot.slane %v1175_v14, 6  ;;  %v391_v25 = vrot.slane %v1129_v3, 4 }
  0x1e   : > { %v387_v26 = vrot.slane %v1175_v14, 4  ;;  %v388_v27 = vrot.slane %v1156_v9, 4  ;;  %v358_v31 = vrot.slane %v1186_v18, 6  ;;  %v357_v36 = vrot.slane %v1127_v2, 6 }
  0x1f   : > { %v429_v44 = vrot.slane %v1186_v18, 2  ;;  %v393_v52 = vrot.slane %v1127_v2, 4  ;;  %v394_v53 = vrot.slane %v1186_v18, 4  ;;  %v392_v62 = vrot.slane %v1140_v6, 4 }
  0x20   : > { %519 = vrot.lane.b32.xlu0 %v1140_v6, %s1071_s29  ;;  %462 = vrot.lane.b32.xlu2 %v354_v5, %s1071_s29 }
  0x21   : > { %437 = vrot.lane.b32.xlu1 %v1129_v3, %s1072_s30 }
  0x23   : > { %v1221_v28 = vld.sshfl [vmem:[#allocation1] sm:$0xff pattern:$0x73625140]  ;;  %v1223_v29 = vld.sshfl [vmem:[#allocation1 + $0x8] sm:$0xff pattern:$0x73625140] }
  0x24   : > { %v359_v30 = vrot.slane %v1221_v28, 6  ;;  %v349_v33 = vld.sshfl [vmem:[#allocation1 + $0x10] sm:$0xff pattern:$0x73625140]  ;;  %v457_v35 = vrot.slane %v1223_v29, 6  ;;  %v430_v38 = vrot.slane %v1221_v28, 2 }
  0x25   : > { %v485_v39 = vrot.slane %v1223_v29, 2  ;;  %v486_v43 = vrot.slane %v349_v33, 2  ;;  %v395_v59 = vrot.slane %v1221_v28, 4 }
  0x28   : > { %464 = vrot.lane.b32.xlu2 %v355_v7, %s1071_s29  ;;  %513 = vrot.lane.b32.xlu0 %v1148_v8, %s1071_s29 }
  0x29   : > { %515 = vrot.lane.b32.xlu1 %v1135_v4, %s1071_s29 }
  0x30   : > { %439 = vrot.lane.b32.xlu2 %v1140_v6, %s1072_s30  ;;  %431 = vrot.lane.b32.xlu0 %v1156_v9, %s1072_s30 }
  0x31   : > { %433 = vrot.lane.b32.xlu1 %v1148_v8, %s1072_s30 }
  0x38   : > { %466 = vrot.lane.b32.xlu2 %v356_v10, %s1071_s29  ;;  %458 = vrot.lane.b32.xlu0 %v352_v11, %s1071_s29 }
  0x39   : > { %460 = vrot.lane.b32.xlu1 %v353_v12, %s1071_s29 }
  0x40   : > { %364 = vrot.lane.b32.xlu2 %v353_v12, %s1072_s30  ;;  %491 = vrot.lane.b32.xlu0 %v426_v15, %s1072_s30 }
  0x41   : > { %493 = vrot.lane.b32.xlu1 %v427_v16, %s1072_s30 }
  0x48   : > { %489 = vrot.lane.b32.xlu2 %v425_v19, %s1072_s30  ;;  %366 = vrot.lane.b32.xlu0 %v354_v5, %s1072_s30 }
  0x49   : > { %487 = vrot.lane.b32.xlu1 %v424_v20, %s1072_s30 }
  0x50   : > { %402 = vrot.lane.b32.xlu2 %v390_v21, %s1071_s29  ;;  %495 = vrot.lane.b32.xlu0 %v428_v22, %s1072_s30 }
  0x51   : > { %400 = vrot.lane.b32.xlu1 %v389_v23, %s1071_s29 }
  0x58   : > { %368 = vrot.lane.b32.xlu2 %v355_v7, %s1072_s30  ;;  %360 = vrot.lane.b32.xlu0 %v351_v24, %s1072_s30 }
  0x59   : > { %362 = vrot.lane.b32.xlu1 %v352_v11, %s1072_s30 }
  0x60   : > { %404 = vrot.lane.b32.xlu2 %v391_v25, %s1071_s29  ;;  %396 = vrot.lane.b32.xlu0 %v387_v26, %s1071_s29 }
  0x61   : > { %398 = vrot.lane.b32.xlu1 %v388_v27, %s1071_s29 }
  0x68   : > { %443 = vrot.lane.b32.xlu2 %v1186_v18, %s1072_s30  ;;  %525 = vrot.lane.b32.xlu0 %v1221_v28, %s1071_s29 }
  0x69   : > { %527 = vrot.lane.b32.xlu1 %v1223_v29, %s1071_s29 }
  0x70   : > { %445 = vrot.lane.b32.xlu0 %v1221_v28, %s1072_s30  ;;  %472 = vrot.lane.b32.xlu2 %v359_v30, %s1071_s29 }
  0x71   : > { %470 = vrot.lane.b32.xlu1 %v358_v31, %s1071_s29 }
  0x72   : > { %v1237_v32 = vpop.permute.xlu2 %521 }
  0x78   : > { %523 = vrot.lane.b32.xlu0 %v1186_v18, %s1071_s29  ;;  %441 = vrot.lane.b32.xlu2 %v1127_v2, %s1072_s30 }
  0x79   : > { %529 = vrot.lane.b32.xlu1 %v349_v33, %s1071_s29 }
  0x7a   : > { %v463_v34 = vpop.permute.xlu2 %462 }
  0x80   : > { %447 = vrot.lane.b32.xlu0 %v1223_v29, %s1072_s30  ;;  %474 = vrot.lane.b32.xlu2 %v457_v35, %s1071_s29 }
  0x81   : > { %468 = vrot.lane.b32.xlu1 %v357_v36, %s1071_s29 }
  0x82   : > { %v1250_v37 = vpop.permute.xlu2 %464 }
  0x83   : > { %v478_v12 = vsel %vm414_vm0, %v463_v34, %v1250_v37 }
  0x88   : > { %499 = vrot.lane.b32.xlu0 %v430_v38, %s1072_s30  ;;  %372 = vrot.lane.b32.xlu2 %v357_v36, %s1072_s30 }
  0x89   : > { %501 = vrot.lane.b32.xlu1 %v485_v39, %s1072_s30 }
  0x8a   : > { %v518_v40 = vpop.permute.xlu0 %517  ;;  %v1259_v41 = vpop.permute.xlu2 %439 }
  0x8b   : > { %v436_v42 = vpop.permute.xlu1 %435 }
  0x90   : > { %374 = vrot.lane.b32.xlu0 %v358_v31, %s1072_s30  ;;  %503 = vrot.lane.b32.xlu2 %v486_v43, %s1072_s30 }
  0x91   : > { %497 = vrot.lane.b32.xlu1 %v429_v44, %s1072_s30 }
  0x92   : > { %v520_v45 = vpop.permute.xlu0 %519  ;;  %v1267_v46 = vpop.permute.xlu2 %466 }
  0x93   : > { %v438_v47 = vpop.permute.xlu1 %437  ;;  %v533_v48 = vsel %vm414_vm0, %v518_v40, %v520_v45  ;;  %v534_v49 = vsel %vm414_vm0, %v520_v45, %v1237_v32 }
  0x94   : > { %v680_v50 = vsel %vm539_vm1, %v533_v48, 0  ;;  %v683_v51 = vsel %vm539_vm1, %v534_v49, 0  ;;  %v451_v13 = vsel %vm378_vm2, %v436_v42, %v438_v47 }
  0x95   : > { %728 = vmatpush.bf16.msra.mxu2 %v680_v50  ;;  %741 = vmatpush.bf16.msra.mxu3 %v683_v51  ;;  %v606_v26 = vsel %vm539_vm1, %v451_v13, %v478_v12  ;;  %v452_v50 = vsel %vm378_vm2, %v438_v47, %v1259_v41  ;;  %v479_v51 = vsel %vm414_vm0, %v1250_v37, %v1267_v46 }
  0x96   : > { %v627_v36 = vsel %vm556_vm3, %v606_v26, %v391_v25 }
  0x98   : > { %408 = vrot.lane.b32.xlu0 %v393_v52, %s1071_s29  ;;  %370 = vrot.lane.b32.xlu2 %v356_v10, %s1072_s30 }
  0x99   : > { %410 = vrot.lane.b32.xlu1 %v394_v53, %s1071_s29 }
  0x9a   : > { %v514_v54 = vpop.permute.xlu0 %513  ;;  %v1285_v55 = vpop.permute.xlu2 %364 }
  0x9b   : > { %v516_v56 = vpop.permute.xlu1 %515 }
  0x9c   : > { %v531_v57 = vsel %vm414_vm0, %v514_v54, %v516_v56  ;;  %v532_v58 = vsel %vm414_vm0, %v516_v56, %v518_v40 }
  0x9d   : > { %v674_v60 = vsel %vm539_vm1, %v531_v57, 0  ;;  %v677_v61 = vsel %vm539_vm1, %v532_v58, 0  ;;  %v609_v58 = vsel %vm539_vm1, %v452_v50, %v479_v51 }
  0x9e   : > { %702 = vmatpush.bf16.msra.mxu0 %v674_v60  ;;  %715 = vmatpush.bf16.msra.mxu1 %v677_v61 }
  0xa0   : > { %376 = vrot.lane.b32.xlu0 %v359_v30, %s1072_s30  ;;  %412 = vrot.lane.b32.xlu2 %v395_v59, %s1071_s29 }
  0xa1   : > { %406 = vrot.lane.b32.xlu1 %v392_v62, %s1071_s29 }
  0xa2   : > { %v490_v63 = vpop.permute.xlu2 %489  ;;  %v432_v0 = vpop.permute.xlu0 %431 }
  0xa3   : > { %v434_v1 = vpop.permute.xlu1 %433 }
  0xa4   : > { %v450_v17 = vsel %vm378_vm2, %v434_v1, %v436_v42  ;;  %v449_v43 = vsel %vm378_vm2, %v432_v0, %v434_v1  ;;  %v629_v0 = vsel %vm556_vm3, %v609_v58, %v392_v62 }
  0xaa   : > { %v459_v5 = vpop.permute.xlu0 %458  ;;  %v403_v7 = vpop.permute.xlu2 %402 }
  0xab   : > { %v461_v10 = vpop.permute.xlu1 %460 }
  0xac   : > { %v477_v11 = vsel %vm414_vm0, %v461_v10, %v463_v34  ;;  %v476_v42 = vsel %vm414_vm0, %v459_v5, %v461_v10 }
  0xad   : > { %v603_v24 = vsel %vm539_vm1, %v450_v17, %v477_v11 }
  0xae   : > { %v625_v33 = vsel %vm556_vm3, %v603_v24, %v390_v21  ;;  %v600_v21 = vsel %vm539_vm1, %v449_v43, %v476_v42 }
  0xaf   : > { %v623_v25 = vsel %vm556_vm3, %v600_v21, %v389_v23 }
  0xb2   : > { %v492_v27 = vpop.permute.xlu0 %491  ;;  %v1314_v39 = vpop.permute.xlu2 %368 }
  0xb3   : > { %v494_v30 = vpop.permute.xlu1 %493  ;;  %v506_v31 = vsel %vm378_vm2, %v490_v63, %v492_v27 }
  0xb4   : > { %v507_v34 = vsel %vm378_vm2, %v492_v27, %v494_v30  ;;  %v642_v35 = vsel %vm573_vm4, %v625_v33, %v506_v31 }
  0xb5   : > { %716 = vmatpush.bf16.msra.mxu1 %v642_v35  ;;  %v645_v40 = vsel %vm573_vm4, %v627_v36, %v507_v34 }
  0xb6   : > { %729 = vmatpush.bf16.msra.mxu2 %v645_v40 }
  0xba   : > { %v367_v45 = vpop.permute.xlu0 %366  ;;  %v1330_v56 = vpop.permute.xlu2 %404 }
  0xbb   : > { %v488_v48 = vpop.permute.xlu1 %487  ;;  %v382_v57 = vsel %vm378_vm2, %v367_v45, %v1314_v39  ;;  %v381_v23 = vsel %vm378_vm2, %v1285_v55, %v367_v45  ;;  %v418_v47 = vsel %vm414_vm0, %v403_v7, %v1330_v56 }
  0xbc   : > { %v505_v49 = vsel %vm378_vm2, %v488_v48, %v490_v63  ;;  %v547_v60 = vsel %vm539_vm1, %v1135_v4, %v382_v57  ;;  %v545_v1 = vsel %vm539_vm1, %v1148_v8, %v381_v23  ;;  %v423_v4 = vrot.slane %v1156_v9, 2  ;;  %v1381_v48 = vld [vmem:[%s1531_s0] sm:$0x3] }
  0xbd   : > { %v639_v54 = vsel %vm573_vm4, %v623_v25, %v505_v49  ;;  %v564_v12 = vsel %vm556_vm3, %v547_v60, %v418_v47 }
  0xbe   : > { %703 = vmatpush.bf16.msra.mxu0 %v639_v54  ;;  %v584_v62 = vsel %vm573_vm4, %v564_v12, %v426_v15  ;;  %v484_v12 = vrot.slane %v1223_v29, 4 }
  0xc2   : > { %v1341_v37 = vpop.permute.xlu0 %495  ;;  %v1358_v17 = vpop.permute.xlu2 %443 }
  0xc3   : > { %v401_v61 = vpop.permute.xlu1 %400  ;;  %v508_v63 = vsel %vm378_vm2, %v494_v30, %v1341_v37 }
  0xc4   : > { %v417_v5 = vsel %vm414_vm0, %v401_v61, %v403_v7  ;;  %v648_v10 = vsel %vm573_vm4, %v629_v0, %v508_v63  ;;  %v1073_v0 = vmov 0  }
  0xc5   : > { %742 = vmatpush.bf16.msra.mxu3 %v648_v10  ;;  %v562_v11 = vsel %vm556_vm3, %v545_v1, %v417_v5  ;;  %1062 = vset.pattern.permute.xlu0 %v1073_v0 }
  0xc6   : > { %v581_v13 = vsel %vm573_vm4, %v562_v11, %v425_v19 }
  0xc7   : > { %730 = vmatpush.bf16.msra.mxu2 %v581_v13 }
  0xc9   : > { %743 = vmatpush.bf16.msra.mxu3 %v584_v62 }
  0xca   : > { %v361_v7 = vpop.permute.xlu0 %360  ;;  %v473_v31 = vpop.permute.xlu2 %472  ;;  %1041 = vmatmul.msk.bf16.vlgmr.msra.gmra.mxu2 %vm669_vm5, %v1381_v48 }
  0xcb   : > { %v363_v24 = vpop.permute.xlu1 %362 }
  0xcc   : > { %v380_v26 = vsel %vm378_vm2, %v363_v24, %v1285_v55  ;;  %v379_v27 = vsel %vm378_vm2, %v361_v7, %v363_v24  ;;  %1042 = vmatmul.msk.bf16.vlgmr.msra.gmra.mxu3 %vm669_vm5, %v1381_v48 }
  0xcd   : > { %v543_v33 = vsel %vm539_vm1, %v1156_v9, %v380_v26  ;;  %v541_v15 = vsel %vm539_vm1, %v1175_v14, %v379_v27 }
  0xd2   : > { %v397_v30 = vpop.permute.xlu0 %396  ;;  %v442_v21 = vpop.permute.xlu2 %441 }
  0xd3   : > { %v399_v19 = vpop.permute.xlu1 %398 }
  0xd4   : > { %v416_v34 = vsel %vm414_vm0, %v399_v19, %v401_v61  ;;  %v415_v35 = vsel %vm414_vm0, %v397_v30, %v399_v19 }
  0xd5   : > { %v558_v36 = vsel %vm556_vm3, %v541_v15, %v415_v35  ;;  %v560_v55 = vsel %vm556_vm3, %v543_v33, %v416_v34  ;;  %v453_v34 = vsel %vm378_vm2, %v1259_v41, %v442_v21  ;;  %v454_v35 = vsel %vm378_vm2, %v442_v21, %v1358_v17 }
  0xd6   : > { %v575_v40 = vsel %vm573_vm4, %v558_v36, %v423_v4  ;;  %v578_v42 = vsel %vm573_vm4, %v560_v55, %v424_v20 }
  0xd7   : > { %704 = vmatpush.bf16.msra.mxu0 %v575_v40  ;;  %717 = vmatpush.bf16.msra.mxu1 %v578_v42 }
  0xda   : > { %v526_v9 = vpop.permute.xlu0 %525  ;;  %1039 = vmatmul.msk.bf16.vlgmr.msra.gmra.mxu0 %vm669_vm5, %v1381_v48  ;;  %1040 = vmatmul.msk.bf16.vlgmr.msra.gmra.mxu1 %vm669_vm5, %v1381_v48  ;;  %v475_v49 = vpop.permute.xlu2 %474 }
  0xdb   : > { %v528_v43 = vpop.permute.xlu1 %527  ;;  %v483_v11 = vsel %vm414_vm0, %v473_v31, %v475_v49 }
  0xdc   : > { %v537_v14 = vsel %vm414_vm0, %v526_v9, %v528_v43 }
  0xdd   : > { %v692_v45 = vsel %vm539_vm1, %v537_v14, 0 }
  0xde   : > { %780 = vmatpush.bf16.msrb.mxu2 %v692_v45 }
  0xe2   : > { %v446_v8 = vpop.permute.xlu0 %445  ;;  %v373_v60 = vpop.permute.xlu2 %372 }
  0xe3   : > { %v471_v20 = vpop.permute.xlu1 %470  ;;  %v455_v5 = vsel %vm378_vm2, %v1358_v17, %v446_v8 }
  0xe4   : > { %v482_v1 = vsel %vm414_vm0, %v471_v20, %v473_v31 }
  0xe5   : > { %v618_v13 = vsel %vm539_vm1, %v455_v5, %v482_v1 }
  0xe6   : > { %v635_v4 = vsel %vm556_vm3, %v618_v13, %v395_v59 }
  0xea   : > { %v524_v25 = vpop.permute.xlu0 %523  ;;  %v504_v24 = vpop.permute.xlu2 %503 }
  0xeb   : > { %v530_v50 = vpop.permute.xlu1 %529  ;;  %v535_v51 = vsel %vm414_vm0, %v1237_v32, %v524_v25  ;;  %v536_v54 = vsel %vm414_vm0, %v524_v25, %v526_v9  ;;  %v663_v32 = vld [vmem:[%s1532_s1] sm:$0xf] }
  0xec   : > { %v686_v57 = vsel %vm539_vm1, %v535_v51, 0  ;;  %v689_v58 = vsel %vm539_vm1, %v536_v54, 0  ;;  %v538_v23 = vsel %vm414_vm0, %v528_v43, %v530_v50  ;;  %666 = vperm.xlu0 %1062, %v663_v32  }
  0xed   : > { %754 = vmatpush.bf16.msrb.mxu0 %v686_v57  ;;  %767 = vmatpush.bf16.msrb.mxu1 %v689_v58  ;;  %v695_v47 = vsel %vm539_vm1, %v538_v23, 0 }
  0xee   : > { %793 = vmatpush.bf16.msrb.mxu3 %v695_v47 }
  0xf2   : > { %v448_v61 = vpop.permute.xlu0 %447  ;;  %v371_v14 = vpop.permute.xlu2 %370 }
  0xf3   : > { %v469_v63 = vpop.permute.xlu1 %468  ;;  %v456_v10 = vsel %vm378_vm2, %v446_v8, %v448_v61  ;;  %v383_v49 = vsel %vm378_vm2, %v1314_v39, %v371_v14  ;;  %v384_v25 = vsel %vm378_vm2, %v371_v14, %v373_v60 }
  0xf4   : > { %v621_v62 = vsel %vm539_vm1, %v456_v10, %v483_v11  ;;  %v480_v33 = vsel %vm414_vm0, %v1267_v46, %v469_v63  ;;  %v481_v15 = vsel %vm414_vm0, %v469_v63, %v471_v20  ;;  %v549_v54 = vsel %vm539_vm1, %v1129_v3, %v383_v49 }
  0xf5   : > { %v637_v19 = vsel %vm556_vm3, %v621_v62, %v484_v12  ;;  %v612_v59 = vsel %vm539_vm1, %v453_v34, %v480_v33  ;;  %v615_v36 = vsel %vm539_vm1, %v454_v35, %v481_v15  ;;  %v551_v57 = vsel %vm539_vm1, %v1140_v6, %v384_v25 }
  0xf6   : > { %v631_v9 = vsel %vm556_vm3, %v612_v59, %v393_v52  ;;  %v633_v41 = vsel %vm556_vm3, %v615_v36, %v394_v53 }
  0xfa   : > { %v500_v7 = vpop.permute.xlu0 %499  ;;  %v413_v50 = vpop.permute.xlu2 %412 }
  0xfb   : > { %v502_v26 = vpop.permute.xlu1 %501 }
  0xfc   : > { %v512_v27 = vsel %vm378_vm2, %v502_v26, %v504_v24  ;;  %v511_v30 = vsel %vm378_vm2, %v500_v7, %v502_v26 }
  0xfd   : > { %v657_v31 = vsel %vm573_vm4, %v635_v4, %v511_v30  ;;  %v660_v29 = vsel %vm573_vm4, %v637_v19, %v512_v27  ;;  %v834_v19 = vld [vmem:[%s302_s25] sm:$0xff] }
  0xfe   : > { %781 = vmatpush.bf16.msrb.mxu2 %v657_v31  ;;  %794 = vmatpush.bf16.msrb.mxu3 %v660_v29  ;;  %v835_v31 = vunpack.c.l.bf16 %v834_v19 }
 0x100   : > { %v839_v29 = vperm.slane %v835_v31, 0  ;;  %v840_v33 = vperm.slane %v835_v31, 2  ;;  %v841_v15 = vperm.slane %v835_v31, 4  ;;  %v842_v59 = vperm.slane %v835_v31, 6 }
 0x102   : > { %v375_v55 = vpop.permute.xlu0 %374  ;;  %v855_v34 = vperm.slane %v839_v29, 0  ;;  %v856_v35 = vperm.slane %v840_v33, 0  ;;  %v857_v36 = vperm.slane %v841_v15, 0 }
 0x103   : > { %v498_v40 = vpop.permute.xlu1 %497  ;;  %v385_v21 = vsel %vm378_vm2, %v373_v60, %v375_v55 }
 0x104   : > { %v509_v42 = vsel %vm378_vm2, %v1341_v37, %v498_v40  ;;  %v510_v46 = vsel %vm378_vm2, %v498_v40, %v500_v7  ;;  %v553_v8 = vsel %vm539_vm1, %v1127_v2, %v385_v21 }
 0x105   : > { %v651_v17 = vsel %vm573_vm4, %v631_v9, %v509_v42  ;;  %v654_v43 = vsel %vm573_vm4, %v633_v41, %v510_v46  ;;  %v858_v42 = vperm.slane %v842_v59, 0  ;;  %v836_v41 = vunpack.c.h.bf16 %v834_v19 }
 0x106   : > { %755 = vmatpush.bf16.msrb.mxu0 %v651_v17  ;;  %768 = vmatpush.bf16.msrb.mxu1 %v654_v43 }
 0x10a   : > { %v409_v37 = vpop.permute.xlu0 %408 }
 0x10b   : > { %v411_v45 = vpop.permute.xlu1 %410 }
 0x10c   : > { %v421_v52 = vsel %vm414_vm0, %v409_v37, %v411_v45  ;;  %v422_v23 = vsel %vm414_vm0, %v411_v45, %v413_v50 }
 0x10d   : > { %v570_v20 = vsel %vm556_vm3, %v553_v8, %v421_v52  ;;  %v845_v8 = vperm.slane %v836_v41, 4  ;;  %v843_v52 = vperm.slane %v836_v41, 0 }
 0x10e   : > { %v593_v53 = vsel %vm573_vm4, %v570_v20, %v429_v44  ;;  %v844_v20 = vperm.slane %v836_v41, 2 }
 0x10f   : > { %782 = vmatpush.bf16.msrb.mxu2 %v593_v53 }
 0x112   : > { %1045 = vmatmul.msk.bf16.vlgmr.msrb.gmra.mxu2 %vm669_vm5, %v1381_v48  ;;  %v377_v51 = vpop.permute.xlu0 %376 }
 0x113   : > { %v407_v58 = vpop.permute.xlu1 %406  ;;  %v386_v44 = vsel %vm378_vm2, %v375_v55, %v377_v51 }
 0x114   : > { %v419_v39 = vsel %vm414_vm0, %v1330_v56, %v407_v58  ;;  %v420_v47 = vsel %vm414_vm0, %v407_v58, %v409_v37  ;;  %v555_v60 = vsel %vm539_vm1, %v1186_v18, %v386_v44  ;;  %v861_v44 = vperm.slane %v845_v8, 0 }
 0x115   : > { %v566_v61 = vsel %vm556_vm3, %v549_v54, %v419_v39  ;;  %v568_v3 = vsel %vm556_vm3, %v551_v57, %v420_v47  ;;  %v572_v63 = vsel %vm556_vm3, %v555_v60, %v422_v23  ;;  %v859_v23 = vperm.slane %v843_v52, 0 }
 0x116   : > { %v587_v0 = vsel %vm573_vm4, %v566_v61, %v427_v16  ;;  %v590_v56 = vsel %vm573_vm4, %v568_v3, %v428_v22  ;;  %v596_v32 = vsel %vm573_vm4, %v572_v63, %v430_v38  ;;  %v860_v39 = vperm.slane %v844_v20, 0 }
 0x117   : > { %756 = vmatpush.bf16.msrb.mxu0 %v587_v0  ;;  %769 = vmatpush.bf16.msrb.mxu1 %v590_v56  ;;  %v846_v56 = vperm.slane %v836_v41, 6 }
 0x118   : > { %795 = vmatpush.bf16.msrb.mxu3 %v596_v32 }
 0x11a   : > { %1043 = vmatmul.msk.bf16.vlgmr.msrb.gmra.mxu0 %vm669_vm5, %v1381_v48  ;;  %1044 = vmatmul.msk.bf16.vlgmr.msrb.gmra.mxu1 %vm669_vm5, %v1381_v48 }
 0x11b   : > { %1046 = vmatmul.msk.bf16.vlgmr.msrb.gmra.mxu3 %vm669_vm5, %v1381_v48 }
 0x14d   : > { %v732_v16 = vpop.f32.mrf.mxu2 }
 0x14f   : > { %v745_v18 = vpop.f32.mrf.mxu3 }
 0x155   : > { %v734_v13 = vpop.f32.mrf.mxu2 }
 0x157   : > { %v706_v2 = vpop.f32.mrf.mxu0  ;;  %v719_v6 = vpop.f32.mrf.mxu1 }
 0x158   : > { %v747_v7 = vpop.f32.mrf.mxu3 }
 0x15e   : > { %v1480_v38 = vpop.permute.xlu0 %666 }
 0x15f   : > { %v708_v22 = vpop.f32.mrf.mxu0  ;;  %v721_v28 = vpop.f32.mrf.mxu1  ;;  %v707_v1 = vadd.f32 %v706_v2, %v1480_v38  ;;  %v720_v5 = vadd.f32 %v719_v6, %v1480_v38  ;;  %v733_v10 = vadd.f32 %v732_v16, %v1480_v38  ;;  %v746_v11 = vadd.f32 %v745_v18, %v1480_v38 }
 0x161   : > { %v801_v12 = vpack.c.bf16 %v720_v5, %v707_v1  ;;  %v802_v48 = vpack.c.bf16 %v746_v11, %v733_v10  ;;  %v863_v55 = vmul.f32 %v855_v34, %v707_v1  ;;  %v864_v40 = vmul.f32 %v856_v35, %v720_v5 }
 0x162   : > { %v865_v46 = vmul.f32 %v857_v36, %v733_v10  ;;  %v866_v21 = vmul.f32 %v858_v42, %v746_v11 }
 0x163   : > { %v809_v62 = vrot.slane %v801_v12, 2  ;;  %v810_v24 = vrot.slane %v802_v48, 4  ;;  %v811_v26 = vrot.slane %v802_v48, 6  ;;  %v888_v9 = vmul.f32 %v863_v55, %v863_v55 }
 0x164   : > { %v889_v17 = vmul.f32 %v864_v40, %v864_v40  ;;  %v871_v43 = vsel %vm556_vm3, %v863_v55, 0.0  ;;  %v872_v14 = vsel %vm556_vm3, %v864_v40, 0.0  ;;  %v890_v37 = vmul.f32 %v865_v46, %v865_v46 }
 0x165   : > { %v817_v27 = vsel %vm539_vm1, %v801_v12, %v809_v62  ;;  %v821_v30 = vsel %vm818_vm6, %v810_v24, %v811_v26  ;;  %v896_v45 = vsel %vm556_vm3, %v888_v9, 0.0  ;;  %v873_v49 = vadd.f32 %v872_v14, %v871_v43 }
 0x166   : > { %v822_v4 = vsel %vm556_vm3, %v817_v27, %v821_v30  ;;  %v897_v53 = vsel %vm556_vm3, %v889_v17, 0.0  ;;  %v874_v25 = vsel %vm556_vm3, %v865_v46, 0.0  ;;  %v891_v51 = vmul.f32 %v866_v21, %v866_v21 }
 0x167   : > { %832 = vst [vmem:[%s1490_s19] sm:$0xff] %v822_v4  ;;  %v898_v54 = vadd.f32 %v897_v53, %v896_v45  ;;  %v899_v57 = vsel %vm556_vm3, %v890_v37, 0.0  ;;  %v875_v60 = vadd.f32 %v874_v25, %v873_v49  ;;  %v876_v63 = vsel %vm556_vm3, %v866_v21, 0.0 }
 0x168   : > { %v901_v18 = vsel %vm556_vm3, %v891_v51, 0.0  ;;  %v862_v48 = vperm.slane %v846_v56, 0 }
 0x169   : > { %v900_v32 = vadd.f32 %v899_v57, %v898_v54  ;;  %v877_v22 = vadd.f32 %v876_v63, %v875_v60 }
 0x16b   : > { %v902_v13 = vadd.f32 %v901_v18, %v900_v32 }
 0x195   : > { %v784_v50 = vpop.f32.mrf.mxu2 }
 0x196   : > { %v785_v58 = vadd.f32 %v784_v50, %v1480_v38 }
 0x197   : > { %v758_v47 = vpop.f32.mrf.mxu0  ;;  %v771_v61 = vpop.f32.mrf.mxu1 }
 0x198   : > { %v759_v3 = vadd.f32 %v758_v47, %v1480_v38  ;;  %v772_v0 = vadd.f32 %v771_v61, %v1480_v38  ;;  %v869_v2 = vmul.f32 %v861_v44, %v785_v58 }
 0x19a   : > { %v867_v6 = vmul.f32 %v859_v23, %v759_v3  ;;  %v868_v16 = vmul.f32 %v860_v39, %v772_v0  ;;  %v803_v5 = vpack.c.bf16 %v772_v0, %v759_v3  ;;  %v894_v62 = vmul.f32 %v869_v2, %v869_v2 }
 0x19b   : > { %v882_v33 = vsel %vm556_vm3, %v869_v2, 0.0 }
 0x19c   : > { %v878_v28 = vsel %vm556_vm3, %v867_v6, 0.0  ;;  %v892_v1 = vmul.f32 %v867_v6, %v867_v6  ;;  %v893_v11 = vmul.f32 %v868_v16, %v868_v16  ;;  %v880_v24 = vsel %vm556_vm3, %v868_v16, 0.0 }
 0x19d   : > { %v879_v10 = vadd.f32 %v878_v28, %v877_v22  ;;  %v786_v12 = vpop.f32.mrf.mxu2  ;;  %v812_v29 = vrot.slane %v803_v5, 2  ;;  %v907_v55 = vsel %vm556_vm3, %v894_v62, 0.0 }
 0x19e   : > { %v903_v7 = vsel %vm556_vm3, %v892_v1, 0.0  ;;  %v797_v26 = vpop.f32.mrf.mxu3  ;;  %v905_v15 = vsel %vm556_vm3, %v893_v11, 0.0 }
 0x19f   : > { %v798_v27 = vadd.f32 %v797_v26, %v1480_v38  ;;  %v760_v30 = vpop.f32.mrf.mxu0  ;;  %v773_v4 = vpop.f32.mrf.mxu1  ;;  %v881_v19 = vadd.f32 %v880_v24, %v879_v10  ;;  %v904_v31 = vadd.f32 %v903_v7, %v902_v13  ;;  %v825_v17 = vsel %vm539_vm1, %v803_v5, %v812_v29 }
 0x1a1   : > { %v804_v34 = vpack.c.bf16 %v798_v27, %v785_v58  ;;  %v870_v35 = vmul.f32 %v862_v48, %v798_v27  ;;  %v883_v59 = vadd.f32 %v882_v33, %v881_v19  ;;  %v906_v36 = vadd.f32 %v905_v15, %v904_v31 }
 0x1a3   : > { %v813_v40 = vrot.slane %v804_v34, 4  ;;  %v814_v38 = vrot.slane %v804_v34, 6  ;;  %v884_v42 = vsel %vm556_vm3, %v870_v35, 0.0  ;;  %v895_v46 = vmul.f32 %v870_v35, %v870_v35 }
 0x1a4   : > { %v885_v9 = vadd.f32 %v884_v42, %v883_v59  ;;  %v908_v41 = vadd.f32 %v907_v55, %v906_v36 }
 0x1a5   : > { %v828_v43 = vsel %vm818_vm6, %v813_v40, %v814_v38  ;;  %v909_v14 = vsel %vm556_vm3, %v895_v46, 0.0 }
 0x1a6   : > { %v829_v21 = vsel %vm556_vm3, %v825_v17, %v828_v43  ;;  %v799_v37 = vpop.f32.mrf.mxu3  ;;  %886 = vadd.xlane.f32.xlu1 %v885_v9  ;;  %v910_v45 = vadd.f32 %v909_v14, %v908_v41 }
 0x1a7   : > { %833 = vst [vmem:[%s1490_s19 + $0x8] sm:$0xff] %v829_v21 }
 0x1a8   : > { %911 = vadd.xlane.f32.xlu2 %v910_v45 }
 0x219   : > { %v887_v8 = vpop.xlane.xlu1 %886 }
 0x21b   : > { %v912_v52 = vpop.xlane.xlu2 %911 }
 0x21c   : > { %v914_v20 = vsel %vm913_vm7, %v887_v8, %v912_v52 }
 0x21d   : > { %v916_v53 = vsel %vm915_vm8, %v914_v20, 0.0 }
 0x21e   : > { %917 = vst [vmem:[%s313_s28] sm:$0xf] %v916_v53 }
 0x21f PF: > { %s17_s21 = sadd.s32 1, %s1069_s21  }
 0x220   : > { %p14_p7 = scmp.ge.s32.totalorder %s17_s21, 6  }
 0x222   :  { %16 = sbr.rel (!%p14_p7) target bundleno = 1 (0x1), region = 90 }

</bundles_post_ra>
